<compile_context>
chip_gen: v7x
topology: tpu7x:2x2x1
jax: 0.10.0
libtpu: 0.0.40
codegen_flags: <defaults>
</compile_context>

<pallas_src>
import math
import functools

import jax
import jax.numpy as jnp
from jax.experimental import pallas as pl
from jax.experimental.pallas import tpu as pltpu


# ----------------------------- helpers --------------------------------------

def _layer_norm(x, gamma, beta, eps=1e-5):
    mean = jnp.mean(x, axis=-1, keepdims=True)
    var = jnp.mean((x - mean) ** 2, axis=-1, keepdims=True)
    return (x - mean) * jax.lax.rsqrt(var + eps) * gamma + beta


# ----------------------------- kernel ---------------------------------------

def encoder_stack_kernel(x_ref,
                         wq_ref, bq_ref, wk_ref, bk_ref, wv_ref, bv_ref,
                         wo_ref, bo_ref,
                         w1_ref, b1_ref, w2_ref, b2_ref,
                         g1_ref, be1_ref, g2_ref, be2_ref,
                         o_ref, *, n_heads, batch, seq):
    """One grid step == one encoder layer over the full (B*S, D) activation."""
    l = pl.program_id(0)

    # Layer 0: pull the embedded+PE activation into the resident output block.
    # The output block index is constant across the grid, so it stays in VMEM
    # for all layers and acts as the layer-to-layer carry.
    @pl.when(l == 0)
    def _():
        o_ref[...] = x_ref[...]

    x = o_ref[...].astype(jnp.float32)                    # (B*S, D)
    D = x.shape[-1]
    hd = D // n_heads
    inv_sqrt_hd = 1.0 / math.sqrt(hd)

    wq, wk, wv, wo = wq_ref[0], wk_ref[0], wv_ref[0], wo_ref[0]
    bq, bk, bv, bo = bq_ref[0], bk_ref[0], bv_ref[0], bo_ref[0]
    w1, b1, w2, b2 = w1_ref[0], b1_ref[0], w2_ref[0], b2_ref[0]
    g1, be1, g2, be2 = g1_ref[0], be1_ref[0], g2_ref[0], be2_ref[0]

    # QKV projections: single (B*S, D) x (D, D) MXU matmuls over the whole batch.
    q = jnp.dot(x, wq, preferred_element_type=jnp.float32) + bq
    k = jnp.dot(x, wk, preferred_element_type=jnp.float32) + bk
    v = jnp.dot(x, wv, preferred_element_type=jnp.float32) + bv

    # Multi-head scaled dot-product attention (no mask: forward uses mask=None).
    # Gather per-(batch, head) slices into one (B*H, S, hd) operand and run a
    # single batched einsum pair instead of a per-head matmul loop.
    def split_bh(t):
        parts = [t[b * seq:(b + 1) * seq, h * hd:(h + 1) * hd]
                 for b in range(batch) for h in range(n_heads)]
        return jnp.stack(parts, axis=0)                   # (B*H, S, hd)

    q3, k3, v3 = split_bh(q), split_bh(k), split_bh(v)

    s = jnp.einsum('bqd,bkd->bqk', q3, k3,
                   preferred_element_type=jnp.float32) * inv_sqrt_hd
    s = s - jnp.max(s, axis=-1, keepdims=True)
    p = jnp.exp(s)
    p = p * pl.reciprocal(jnp.sum(p, axis=-1, keepdims=True), approx=True)
    o3 = jnp.einsum('bqk,bkd->bqd', p, v3,
                    preferred_element_type=jnp.float32)   # (B*H, S, hd)

    # Re-pack heads back onto the lane axis and batches back onto rows.
    attn = jnp.concatenate(
        [jnp.concatenate([o3[b * n_heads + h] for h in range(n_heads)], axis=-1)
         for b in range(batch)],
        axis=0)                                           # (B*S, D)

    attn = jnp.dot(attn, wo, preferred_element_type=jnp.float32) + bo

    # Residual + LayerNorm (post-LN sublayer ordering).
    # TODO(synk): the referenced custom `transformer_encoder` module is not
    # provided; post-LN (PyTorch nn.TransformerEncoderLayer default) is assumed.
    h1 = _layer_norm(x + attn, g1, be1)

    # Position-wise FFN with ReLU.
    f = jnp.dot(h1, w1, preferred_element_type=jnp.float32) + b1
    f = jnp.maximum(f, 0.0)
    f = jnp.dot(f, w2, preferred_element_type=jnp.float32) + b2

    h2 = _layer_norm(h1 + f, g2, be2)
    o_ref[...] = h2.astype(o_ref.dtype)


# ----------------------------- wrapper ---------------------------------------

def encoder_stack_call(x2d, params, n_heads, batch, seq):
    BS, D = x2d.shape
    L = params["wq"].shape[0]
    F = params["w1"].shape[-1]

    kernel = functools.partial(encoder_stack_kernel,
                               n_heads=n_heads, batch=batch, seq=seq)

    # Per-layer weight block: leading layer axis selected by the grid index,
    # full (last two dims == array dims) otherwise.
    w3 = lambda d0, d1: pl.BlockSpec((1, d0, d1), lambda l: (l, 0, 0))

    in_specs = [
        pl.BlockSpec((BS, D), lambda l: (0, 0)),   # x (only used at layer 0)
        w3(D, D), w3(1, D),                        # wq, bq
        w3(D, D), w3(1, D),                        # wk, bk
        w3(D, D), w3(1, D),                        # wv, bv
        w3(D, D), w3(1, D),                        # wo, bo
        w3(D, F), w3(1, F),                        # w1, b1
        w3(F, D), w3(1, D),                        # w2, b2
        w3(1, D), w3(1, D),                        # ln1 gamma, beta
        w3(1, D), w3(1, D),                        # ln2 gamma, beta
    ]

    return pl.pallas_call(
        kernel,
        out_shape=jax.ShapeDtypeStruct((BS, D), jnp.float32),
        grid_spec=pltpu.PrefetchScalarGridSpec(
            num_scalar_prefetch=0,
            grid=(L,),
            in_specs=in_specs,
            # Constant block index across the layer axis => resident in VMEM,
            # carries the activation from layer l to layer l+1.
            out_specs=pl.BlockSpec((BS, D), lambda l: (0, 0)),
        ),
        compiler_params=pltpu.CompilerParams(
            dimension_semantics=("arbitrary",)),
    )(
        x2d,
        params["wq"], params["bq"],
        params["wk"], params["bk"],
        params["wv"], params["bv"],
        params["wo"], params["bo"],
        params["w1"], params["b1"],
        params["w2"], params["b2"],
        params["g1"], params["be1"],
        params["g2"], params["be2"],
    )


def transformer_encoder_forward(tokens, params, *, n_heads):
    B, S = tokens.shape
    # Embedding gather (sqrt(vocab_size) scale already folded into the table)
    # plus positional-encoding add: plain JAX glue, fused by XLA into the gather.
    x = params["embedding"][tokens] + params["pe"][:S][None, :, :]   # (B, S, D)
    D = x.shape[-1]
    x2d = x.reshape(B * S, D).astype(jnp.float32)
    y2d = encoder_stack_call(x2d, params, n_heads, B, S)
    return y2d.reshape(B, S, D)


# ----------------------------- parameter init -------------------------------

def make_sinusoidal_pe(max_len, d_model):
    pos = jnp.arange(max_len, dtype=jnp.float32)[:, None]
    div = jnp.exp(jnp.arange(0, d_model, 2, dtype=jnp.float32)
                  * (-math.log(10000.0) / d_model))
    pe = jnp.zeros((max_len, d_model), dtype=jnp.float32)
    pe = pe.at[:, 0::2].set(jnp.sin(pos * div))
    pe = pe.at[:, 1::2].set(jnp.cos(pos * div))
    return pe


def init_params(key, vocab_size, emb_dim, n_heads, hidden_size,
                padding_index, max_len, num_layers):
    keys = jax.random.split(key, 1 + num_layers)
    emb = 0.02 * jax.random.normal(keys[0], (vocab_size, emb_dim), jnp.float32)
    # Fold the sqrt(vocab_size) scale from the forward pass into the table.
    emb = emb * float(math.sqrt(vocab_size))
    emb = emb.at[padding_index].set(0.0)

    layers = []
    for li in range(num_layers):
        lk = jax.random.split(keys[1 + li], 6)
        s = 0.02
        layers.append(dict(
            wq=s * jax.random.normal(lk[0], (emb_dim, emb_dim), jnp.float32),
            bq=jnp.zeros((1, emb_dim), jnp.float32),
            wk=s * jax.random.normal(lk[1], (emb_dim, emb_dim), jnp.float32),
            bk=jnp.zeros((1, emb_dim), jnp.float32),
            wv=s * jax.random.normal(lk[2], (emb_dim, emb_dim), jnp.float32),
            bv=jnp.zeros((1, emb_dim), jnp.float32),
            wo=s * jax.random.normal(lk[3], (emb_dim, emb_dim), jnp.float32),
            bo=jnp.zeros((1, emb_dim), jnp.float32),
            w1=s * jax.random.normal(lk[4], (emb_dim, hidden_size), jnp.float32),
            b1=jnp.zeros((1, hidden_size), jnp.float32),
            w2=s * jax.random.normal(lk[5], (hidden_size, emb_dim), jnp.float32),
            b2=jnp.zeros((1, emb_dim), jnp.float32),
            g1=jnp.ones((1, emb_dim), jnp.float32),
            be1=jnp.zeros((1, emb_dim), jnp.float32),
            g2=jnp.ones((1, emb_dim), jnp.float32),
            be2=jnp.zeros((1, emb_dim), jnp.float32),
        ))

    # Stack per-layer params with a leading layer axis so the fused kernel can
    # index them with the layer grid coordinate.
    stacked = {name: jnp.stack([ly[name] for ly in layers], axis=0)
               for name in layers[0]}

    params = dict(
        embedding=emb,
        pe=make_sinusoidal_pe(max_len, emb_dim),
        vocab_size=vocab_size,
    )
    params.update(stacked)
    return params


# ----------------------------- main ------------------------------------------

if __name__ == "__main__":
    # Small shapes consistent with the module's forward.
    vocab_size = 50
    emb_dim = 32         # d_model
    n_heads = 4
    hidden_size = 64     # d_ff
    padding_index = 0
    max_len = 32
    num_layers = 2
    B, S = 2, 8

    key = jax.random.PRNGKey(0)
    pkey, tkey = jax.random.split(key)
    params = init_params(pkey, vocab_size, emb_dim, n_heads, hidden_size,
                         padding_index, max_len, num_layers)
    tokens = jax.random.randint(tkey, (B, S), 0, vocab_size, dtype=jnp.int32)

    out = transformer_encoder_forward(tokens, params, n_heads=n_heads)
    out = jax.block_until_ready(out)
    assert out.shape == (B, S, emb_dim)
    assert bool(jnp.all(jnp.isfinite(out)))
    print("KERNEL_OK")
</pallas_src>

<mosaic_0001>
module attributes {stable_mosaic.version = 11 : i64} {
  func.func @encoder_stack_kernel(%arg0: i32, %arg1: memref<16x32xf32, #tpu.memory_space<vmem>>, %arg2: memref<1x32x32xf32, #tpu.memory_space<vmem>>, %arg3: memref<1x1x32xf32, #tpu.memory_space<vmem>>, %arg4: memref<1x32x32xf32, #tpu.memory_space<vmem>>, %arg5: memref<1x1x32xf32, #tpu.memory_space<vmem>>, %arg6: memref<1x32x32xf32, #tpu.memory_space<vmem>>, %arg7: memref<1x1x32xf32, #tpu.memory_space<vmem>>, %arg8: memref<1x32x32xf32, #tpu.memory_space<vmem>>, %arg9: memref<1x1x32xf32, #tpu.memory_space<vmem>>, %arg10: memref<1x32x64xf32, #tpu.memory_space<vmem>>, %arg11: memref<1x1x64xf32, #tpu.memory_space<vmem>>, %arg12: memref<1x64x32xf32, #tpu.memory_space<vmem>>, %arg13: memref<1x1x32xf32, #tpu.memory_space<vmem>>, %arg14: memref<1x1x32xf32, #tpu.memory_space<vmem>>, %arg15: memref<1x1x32xf32, #tpu.memory_space<vmem>>, %arg16: memref<1x1x32xf32, #tpu.memory_space<vmem>>, %arg17: memref<1x1x32xf32, #tpu.memory_space<vmem>>, %arg18: memref<16x32xf32, #tpu.memory_space<vmem>>) attributes {dimension_semantics = [#tpu.dimension_semantics<arbitrary>], iteration_bounds = array<i64: 2>, scalar_prefetch = 0 : i64, scratch_operands = 0 : i64, tpu.core_type = #tpu.core_type<tc>, window_params = [{pipeline_mode = #tpu.pipeline_mode<synchronous>, transform_indices = @transform_0, window_bounds = array<i64: 16, 32>}, {transform_indices = @transform_1, window_bounds = array<i64: 1, 32, 32>}, {transform_indices = @transform_2, window_bounds = array<i64: 1, 1, 32>}, {transform_indices = @transform_3, window_bounds = array<i64: 1, 32, 32>}, {transform_indices = @transform_4, window_bounds = array<i64: 1, 1, 32>}, {transform_indices = @transform_5, window_bounds = array<i64: 1, 32, 32>}, {transform_indices = @transform_6, window_bounds = array<i64: 1, 1, 32>}, {transform_indices = @transform_7, window_bounds = array<i64: 1, 32, 32>}, {transform_indices = @transform_8, window_bounds = array<i64: 1, 1, 32>}, {transform_indices = @transform_9, window_bounds = array<i64: 1, 32, 64>}, {transform_indices = @transform_10, window_bounds = array<i64: 1, 1, 64>}, {transform_indices = @transform_11, window_bounds = array<i64: 1, 64, 32>}, {transform_indices = @transform_12, window_bounds = array<i64: 1, 1, 32>}, {transform_indices = @transform_13, window_bounds = array<i64: 1, 1, 32>}, {transform_indices = @transform_14, window_bounds = array<i64: 1, 1, 32>}, {transform_indices = @transform_15, window_bounds = array<i64: 1, 1, 32>}, {transform_indices = @transform_16, window_bounds = array<i64: 1, 1, 32>}, {pipeline_mode = #tpu.pipeline_mode<synchronous>, transform_indices = @transform_17, window_bounds = array<i64: 16, 32>}]} {
    %c0_i32 = arith.constant 0 : i32
    %0 = arith.cmpi eq, %arg0, %c0_i32 : i32
    %1 = arith.extui %0 : i1 to i32
    %c0_i32_0 = arith.constant 0 : i32
    %2 = arith.cmpi ne, %1, %c0_i32_0 : i32
    scf.if %2 {
      %c0_73 = arith.constant 0 : index
      %c0_74 = arith.constant 0 : index
      %187 = vector.load %arg1[%c0_73, %c0_74] : memref<16x32xf32, #tpu.memory_space<vmem>>, vector<16x32xf32>
      %c0_75 = arith.constant 0 : index
      %c0_76 = arith.constant 0 : index
      %188 = vector.load %arg18[%c0_75, %c0_76] : memref<16x32xf32, #tpu.memory_space<vmem>>, vector<16x32xf32>
      tpu.vector_store %arg18[%c0_75, %c0_76], %187 {strides = array<i32>} : memref<16x32xf32, #tpu.memory_space<vmem>>, vector<16x32xf32>,
    } else {
    }
    %c0 = arith.constant 0 : index
    %c0_1 = arith.constant 0 : index
    %3 = vector.load %arg18[%c0, %c0_1] : memref<16x32xf32, #tpu.memory_space<vmem>>, vector<16x32xf32>
    %c0_2 = arith.constant 0 : index
    %c0_3 = arith.constant 0 : index
    %c0_4 = arith.constant 0 : index
    %4 = vector.load %arg2[%c0_2, %c0_3, %c0_4] : memref<1x32x32xf32, #tpu.memory_space<vmem>>, vector<1x32x32xf32>
    %5 = vector.shape_cast %4 : vector<1x32x32xf32> to vector<32x32xf32>
    %c0_5 = arith.constant 0 : index
    %c0_6 = arith.constant 0 : index
    %c0_7 = arith.constant 0 : index
    %6 = vector.load %arg4[%c0_5, %c0_6, %c0_7] : memref<1x32x32xf32, #tpu.memory_space<vmem>>, vector<1x32x32xf32>
    %7 = vector.shape_cast %6 : vector<1x32x32xf32> to vector<32x32xf32>
    %c0_8 = arith.constant 0 : index
    %c0_9 = arith.constant 0 : index
    %c0_10 = arith.constant 0 : index
    %8 = vector.load %arg6[%c0_8, %c0_9, %c0_10] : memref<1x32x32xf32, #tpu.memory_space<vmem>>, vector<1x32x32xf32>
    %9 = vector.shape_cast %8 : vector<1x32x32xf32> to vector<32x32xf32>
    %c0_11 = arith.constant 0 : index
    %c0_12 = arith.constant 0 : index
    %c0_13 = arith.constant 0 : index
    %10 = vector.load %arg8[%c0_11, %c0_12, %c0_13] : memref<1x32x32xf32, #tpu.memory_space<vmem>>, vector<1x32x32xf32>
    %11 = vector.shape_cast %10 : vector<1x32x32xf32> to vector<32x32xf32>
    %c0_14 = arith.constant 0 : index
    %c0_15 = arith.constant 0 : index
    %c0_16 = arith.constant 0 : index
    %12 = vector.load %arg3[%c0_14, %c0_15, %c0_16] : memref<1x1x32xf32, #tpu.memory_space<vmem>>, vector<1x1x32xf32>
    %13 = vector.shape_cast %12 : vector<1x1x32xf32> to vector<1x32xf32>
    %c0_17 = arith.constant 0 : index
    %c0_18 = arith.constant 0 : index
    %c0_19 = arith.constant 0 : index
    %14 = vector.load %arg5[%c0_17, %c0_18, %c0_19] : memref<1x1x32xf32, #tpu.memory_space<vmem>>, vector<1x1x32xf32>
    %15 = vector.shape_cast %14 : vector<1x1x32xf32> to vector<1x32xf32>
    %c0_20 = arith.constant 0 : index
    %c0_21 = arith.constant 0 : index
    %c0_22 = arith.constant 0 : index
    %16 = vector.load %arg7[%c0_20, %c0_21, %c0_22] : memref<1x1x32xf32, #tpu.memory_space<vmem>>, vector<1x1x32xf32>
    %17 = vector.shape_cast %16 : vector<1x1x32xf32> to vector<1x32xf32>
    %c0_23 = arith.constant 0 : index
    %c0_24 = arith.constant 0 : index
    %c0_25 = arith.constant 0 : index
    %18 = vector.load %arg9[%c0_23, %c0_24, %c0_25] : memref<1x1x32xf32, #tpu.memory_space<vmem>>, vector<1x1x32xf32>
    %19 = vector.shape_cast %18 : vector<1x1x32xf32> to vector<1x32xf32>
    %c0_26 = arith.constant 0 : index
    %c0_27 = arith.constant 0 : index
    %c0_28 = arith.constant 0 : index
    %20 = vector.load %arg10[%c0_26, %c0_27, %c0_28] : memref<1x32x64xf32, #tpu.memory_space<vmem>>, vector<1x32x64xf32>
    %21 = vector.shape_cast %20 : vector<1x32x64xf32> to vector<32x64xf32>
    %c0_29 = arith.constant 0 : index
    %c0_30 = arith.constant 0 : index
    %c0_31 = arith.constant 0 : index
    %22 = vector.load %arg11[%c0_29, %c0_30, %c0_31] : memref<1x1x64xf32, #tpu.memory_space<vmem>>, vector<1x1x64xf32>
    %23 = vector.shape_cast %22 : vector<1x1x64xf32> to vector<1x64xf32>
    %c0_32 = arith.constant 0 : index
    %c0_33 = arith.constant 0 : index
    %c0_34 = arith.constant 0 : index
    %24 = vector.load %arg12[%c0_32, %c0_33, %c0_34] : memref<1x64x32xf32, #tpu.memory_space<vmem>>, vector<1x64x32xf32>
    %25 = vector.shape_cast %24 : vector<1x64x32xf32> to vector<64x32xf32>
    %c0_35 = arith.constant 0 : index
    %c0_36 = arith.constant 0 : index
    %c0_37 = arith.constant 0 : index
    %26 = vector.load %arg13[%c0_35, %c0_36, %c0_37] : memref<1x1x32xf32, #tpu.memory_space<vmem>>, vector<1x1x32xf32>
    %27 = vector.shape_cast %26 : vector<1x1x32xf32> to vector<1x32xf32>
    %c0_38 = arith.constant 0 : index
    %c0_39 = arith.constant 0 : index
    %c0_40 = arith.constant 0 : index
    %28 = vector.load %arg14[%c0_38, %c0_39, %c0_40] : memref<1x1x32xf32, #tpu.memory_space<vmem>>, vector<1x1x32xf32>
    %29 = vector.shape_cast %28 : vector<1x1x32xf32> to vector<1x32xf32>
    %c0_41 = arith.constant 0 : index
    %c0_42 = arith.constant 0 : index
    %c0_43 = arith.constant 0 : index
    %30 = vector.load %arg15[%c0_41, %c0_42, %c0_43] : memref<1x1x32xf32, #tpu.memory_space<vmem>>, vector<1x1x32xf32>
    %31 = vector.shape_cast %30 : vector<1x1x32xf32> to vector<1x32xf32>
    %c0_44 = arith.constant 0 : index
    %c0_45 = arith.constant 0 : index
    %c0_46 = arith.constant 0 : index
    %32 = vector.load %arg16[%c0_44, %c0_45, %c0_46] : memref<1x1x32xf32, #tpu.memory_space<vmem>>, vector<1x1x32xf32>
    %33 = vector.shape_cast %32 : vector<1x1x32xf32> to vector<1x32xf32>
    %c0_47 = arith.constant 0 : index
    %c0_48 = arith.constant 0 : index
    %c0_49 = arith.constant 0 : index
    %34 = vector.load %arg17[%c0_47, %c0_48, %c0_49] : memref<1x1x32xf32, #tpu.memory_space<vmem>>, vector<1x1x32xf32>
    %35 = vector.shape_cast %34 : vector<1x1x32xf32> to vector<1x32xf32>
    %cst = arith.constant dense<0.000000e+00> : vector<16x32xf32>
    %36 = tpu.matmul %3, %5, %cst {dimension_numbers = #tpu.dot_dimension_numbers<[1], [0], [0], [1], [0, 0, 1, 1], [], []>} : vector<16x32xf32>, vector<32x32xf32>, vector<16x32xf32> -> vector<16x32xf32>
    %37 = vector.broadcast %13 : vector<1x32xf32> to vector<16x32xf32>
    %38 = arith.addf %36, %37 : vector<16x32xf32>
    %cst_50 = arith.constant dense<0.000000e+00> : vector<16x32xf32>
    %39 = tpu.matmul %3, %7, %cst_50 {dimension_numbers = #tpu.dot_dimension_numbers<[1], [0], [0], [1], [0, 0, 1, 1], [], []>} : vector<16x32xf32>, vector<32x32xf32>, vector<16x32xf32> -> vector<16x32xf32>
    %40 = vector.broadcast %15 : vector<1x32xf32> to vector<16x32xf32>
    %41 = arith.addf %39, %40 : vector<16x32xf32>
    %cst_51 = arith.constant dense<0.000000e+00> : vector<16x32xf32>
    %42 = tpu.matmul %3, %9, %cst_51 {dimension_numbers = #tpu.dot_dimension_numbers<[1], [0], [0], [1], [0, 0, 1, 1], [], []>} : vector<16x32xf32>, vector<32x32xf32>, vector<16x32xf32> -> vector<16x32xf32>
    %43 = vector.broadcast %17 : vector<1x32xf32> to vector<16x32xf32>
    %44 = arith.addf %42, %43 : vector<16x32xf32>
    %45 = vector.extract_strided_slice %38 {offsets = [0, 0], sizes = [8, 8], strides = [1, 1]} : vector<16x32xf32> to vector<8x8xf32>
    %46 = vector.extract_strided_slice %38 {offsets = [0, 8], sizes = [8, 8], strides = [1, 1]} : vector<16x32xf32> to vector<8x8xf32>
    %47 = vector.extract_strided_slice %38 {offsets = [0, 16], sizes = [8, 8], strides = [1, 1]} : vector<16x32xf32> to vector<8x8xf32>
    %48 = vector.extract_strided_slice %38 {offsets = [0, 24], sizes = [8, 8], strides = [1, 1]} : vector<16x32xf32> to vector<8x8xf32>
    %49 = vector.extract_strided_slice %38 {offsets = [8, 0], sizes = [8, 8], strides = [1, 1]} : vector<16x32xf32> to vector<8x8xf32>
    %50 = vector.extract_strided_slice %38 {offsets = [8, 8], sizes = [8, 8], strides = [1, 1]} : vector<16x32xf32> to vector<8x8xf32>
    %51 = vector.extract_strided_slice %38 {offsets = [8, 16], sizes = [8, 8], strides = [1, 1]} : vector<16x32xf32> to vector<8x8xf32>
    %52 = vector.extract_strided_slice %38 {offsets = [8, 24], sizes = [8, 8], strides = [1, 1]} : vector<16x32xf32> to vector<8x8xf32>
    %53 = vector.shape_cast %45 : vector<8x8xf32> to vector<1x8x8xf32>
    %54 = vector.shape_cast %46 : vector<8x8xf32> to vector<1x8x8xf32>
    %55 = vector.shape_cast %47 : vector<8x8xf32> to vector<1x8x8xf32>
    %56 = vector.shape_cast %48 : vector<8x8xf32> to vector<1x8x8xf32>
    %57 = vector.shape_cast %49 : vector<8x8xf32> to vector<1x8x8xf32>
    %58 = vector.shape_cast %50 : vector<8x8xf32> to vector<1x8x8xf32>
    %59 = vector.shape_cast %51 : vector<8x8xf32> to vector<1x8x8xf32>
    %60 = vector.shape_cast %52 : vector<8x8xf32> to vector<1x8x8xf32>
    %61 = tpu.concatenate %53, %54, %55, %56, %57, %58, %59, %60 in 0 : vector<1x8x8xf32>, vector<1x8x8xf32>, vector<1x8x8xf32>, vector<1x8x8xf32>, vector<1x8x8xf32>, vector<1x8x8xf32>, vector<1x8x8xf32>, vector<1x8x8xf32> -> vector<8x8x8xf32>
    %62 = vector.extract_strided_slice %41 {offsets = [0, 0], sizes = [8, 8], strides = [1, 1]} : vector<16x32xf32> to vector<8x8xf32>
    %63 = vector.extract_strided_slice %41 {offsets = [0, 8], sizes = [8, 8], strides = [1, 1]} : vector<16x32xf32> to vector<8x8xf32>
    %64 = vector.extract_strided_slice %41 {offsets = [0, 16], sizes = [8, 8], strides = [1, 1]} : vector<16x32xf32> to vector<8x8xf32>
    %65 = vector.extract_strided_slice %41 {offsets = [0, 24], sizes = [8, 8], strides = [1, 1]} : vector<16x32xf32> to vector<8x8xf32>
    %66 = vector.extract_strided_slice %41 {offsets = [8, 0], sizes = [8, 8], strides = [1, 1]} : vector<16x32xf32> to vector<8x8xf32>
    %67 = vector.extract_strided_slice %41 {offsets = [8, 8], sizes = [8, 8], strides = [1, 1]} : vector<16x32xf32> to vector<8x8xf32>
    %68 = vector.extract_strided_slice %41 {offsets = [8, 16], sizes = [8, 8], strides = [1, 1]} : vector<16x32xf32> to vector<8x8xf32>
    %69 = vector.extract_strided_slice %41 {offsets = [8, 24], sizes = [8, 8], strides = [1, 1]} : vector<16x32xf32> to vector<8x8xf32>
    %70 = vector.shape_cast %62 : vector<8x8xf32> to vector<1x8x8xf32>
    %71 = vector.shape_cast %63 : vector<8x8xf32> to vector<1x8x8xf32>
    %72 = vector.shape_cast %64 : vector<8x8xf32> to vector<1x8x8xf32>
    %73 = vector.shape_cast %65 : vector<8x8xf32> to vector<1x8x8xf32>
    %74 = vector.shape_cast %66 : vector<8x8xf32> to vector<1x8x8xf32>
    %75 = vector.shape_cast %67 : vector<8x8xf32> to vector<1x8x8xf32>
    %76 = vector.shape_cast %68 : vector<8x8xf32> to vector<1x8x8xf32>
    %77 = vector.shape_cast %69 : vector<8x8xf32> to vector<1x8x8xf32>
    %78 = tpu.concatenate %70, %71, %72, %73, %74, %75, %76, %77 in 0 : vector<1x8x8xf32>, vector<1x8x8xf32>, vector<1x8x8xf32>, vector<1x8x8xf32>, vector<1x8x8xf32>, vector<1x8x8xf32>, vector<1x8x8xf32>, vector<1x8x8xf32> -> vector<8x8x8xf32>
    %79 = vector.extract_strided_slice %44 {offsets = [0, 0], sizes = [8, 8], strides = [1, 1]} : vector<16x32xf32> to vector<8x8xf32>
    %80 = vector.extract_strided_slice %44 {offsets = [0, 8], sizes = [8, 8], strides = [1, 1]} : vector<16x32xf32> to vector<8x8xf32>
    %81 = vector.extract_strided_slice %44 {offsets = [0, 16], sizes = [8, 8], strides = [1, 1]} : vector<16x32xf32> to vector<8x8xf32>
    %82 = vector.extract_strided_slice %44 {offsets = [0, 24], sizes = [8, 8], strides = [1, 1]} : vector<16x32xf32> to vector<8x8xf32>
    %83 = vector.extract_strided_slice %44 {offsets = [8, 0], sizes = [8, 8], strides = [1, 1]} : vector<16x32xf32> to vector<8x8xf32>
    %84 = vector.extract_strided_slice %44 {offsets = [8, 8], sizes = [8, 8], strides = [1, 1]} : vector<16x32xf32> to vector<8x8xf32>
    %85 = vector.extract_strided_slice %44 {offsets = [8, 16], sizes = [8, 8], strides = [1, 1]} : vector<16x32xf32> to vector<8x8xf32>
    %86 = vector.extract_strided_slice %44 {offsets = [8, 24], sizes = [8, 8], strides = [1, 1]} : vector<16x32xf32> to vector<8x8xf32>
    %87 = vector.shape_cast %79 : vector<8x8xf32> to vector<1x8x8xf32>
    %88 = vector.shape_cast %80 : vector<8x8xf32> to vector<1x8x8xf32>
    %89 = vector.shape_cast %81 : vector<8x8xf32> to vector<1x8x8xf32>
    %90 = vector.shape_cast %82 : vector<8x8xf32> to vector<1x8x8xf32>
    %91 = vector.shape_cast %83 : vector<8x8xf32> to vector<1x8x8xf32>
    %92 = vector.shape_cast %84 : vector<8x8xf32> to vector<1x8x8xf32>
    %93 = vector.shape_cast %85 : vector<8x8xf32> to vector<1x8x8xf32>
    %94 = vector.shape_cast %86 : vector<8x8xf32> to vector<1x8x8xf32>
    %95 = tpu.concatenate %87, %88, %89, %90, %91, %92, %93, %94 in 0 : vector<1x8x8xf32>, vector<1x8x8xf32>, vector<1x8x8xf32>, vector<1x8x8xf32>, vector<1x8x8xf32>, vector<1x8x8xf32>, vector<1x8x8xf32>, vector<1x8x8xf32> -> vector<8x8x8xf32>
    "tpu.trace_start"() <{level = 10 : i32, message = "bqd,bkd->bqk"}> : () -> ()
    %cst_52 = arith.constant dense<0.000000e+00> : vector<8x8x8xf32>
    %96 = tpu.matmul %61, %78, %cst_52 {dimension_numbers = #tpu.dot_dimension_numbers<[2], [2], [1], [1], [0, 0, 0, 1, 1, 1], [0], [0]>} : vector<8x8x8xf32>, vector<8x8x8xf32>, vector<8x8x8xf32> -> vector<8x8x8xf32>
    "tpu.trace_stop"() : () -> ()
    %cst_53 = arith.constant 0.353553385 : f32
    %97 = vector.broadcast %cst_53 : f32 to vector<8x8x8xf32>
    %98 = arith.mulf %96, %97 : vector<8x8x8xf32>
    %cst_54 = arith.constant dense<0xFF800000> : vector<8x8xf32>
    %99 = vector.multi_reduction <maximumf>, %98, %cst_54 [2] : vector<8x8x8xf32> to vector<8x8xf32>
    %100 = vector.shape_cast %99 : vector<8x8xf32> to vector<8x8x1xf32>
    %101 = vector.broadcast %100 : vector<8x8x1xf32> to vector<8x8x8xf32>
    %102 = arith.subf %98, %101 : vector<8x8x8xf32>
    %103 = math.exp %102 : vector<8x8x8xf32>
    %cst_55 = arith.constant dense<0.000000e+00> : vector<8x8xf32>
    %104 = vector.multi_reduction <add>, %103, %cst_55 [2] : vector<8x8x8xf32> to vector<8x8xf32>
    %105 = vector.shape_cast %104 : vector<8x8xf32> to vector<8x8x1xf32>
    %106 = tpu.reciprocal %105 {approx = true} : vector<8x8x1xf32> -> vector<8x8x1xf32>
    %107 = vector.broadcast %106 : vector<8x8x1xf32> to vector<8x8x8xf32>
    %108 = arith.mulf %103, %107 : vector<8x8x8xf32>
    "tpu.trace_start"() <{level = 10 : i32, message = "bqk,bkd->bqd"}> : () -> ()
    %cst_56 = arith.constant dense<0.000000e+00> : vector<8x8x8xf32>
    %109 = tpu.matmul %108, %95, %cst_56 {dimension_numbers = #tpu.dot_dimension_numbers<[2], [1], [1], [2], [0, 0, 0, 1, 1, 2], [0], [0]>} : vector<8x8x8xf32>, vector<8x8x8xf32>, vector<8x8x8xf32> -> vector<8x8x8xf32>
    "tpu.trace_stop"() : () -> ()
    %110 = vector.extract_strided_slice %109 {offsets = [0, 0, 0], sizes = [1, 8, 8], strides = [1, 1, 1]} : vector<8x8x8xf32> to vector<1x8x8xf32>
    %111 = vector.shape_cast %110 : vector<1x8x8xf32> to vector<8x8xf32>
    %112 = vector.extract_strided_slice %109 {offsets = [1, 0, 0], sizes = [1, 8, 8], strides = [1, 1, 1]} : vector<8x8x8xf32> to vector<1x8x8xf32>
    %113 = vector.shape_cast %112 : vector<1x8x8xf32> to vector<8x8xf32>
    %114 = vector.extract_strided_slice %109 {offsets = [2, 0, 0], sizes = [1, 8, 8], strides = [1, 1, 1]} : vector<8x8x8xf32> to vector<1x8x8xf32>
    %115 = vector.shape_cast %114 : vector<1x8x8xf32> to vector<8x8xf32>
    %116 = vector.extract_strided_slice %109 {offsets = [3, 0, 0], sizes = [1, 8, 8], strides = [1, 1, 1]} : vector<8x8x8xf32> to vector<1x8x8xf32>
    %117 = vector.shape_cast %116 : vector<1x8x8xf32> to vector<8x8xf32>
    %118 = tpu.concatenate %111, %113, %115, %117 in 1 : vector<8x8xf32>, vector<8x8xf32>, vector<8x8xf32>, vector<8x8xf32> -> vector<8x32xf32>
    %119 = vector.extract_strided_slice %109 {offsets = [4, 0, 0], sizes = [1, 8, 8], strides = [1, 1, 1]} : vector<8x8x8xf32> to vector<1x8x8xf32>
    %120 = vector.shape_cast %119 : vector<1x8x8xf32> to vector<8x8xf32>
    %121 = vector.extract_strided_slice %109 {offsets = [5, 0, 0], sizes = [1, 8, 8], strides = [1, 1, 1]} : vector<8x8x8xf32> to vector<1x8x8xf32>
    %122 = vector.shape_cast %121 : vector<1x8x8xf32> to vector<8x8xf32>
    %123 = vector.extract_strided_slice %109 {offsets = [6, 0, 0], sizes = [1, 8, 8], strides = [1, 1, 1]} : vector<8x8x8xf32> to vector<1x8x8xf32>
    %124 = vector.shape_cast %123 : vector<1x8x8xf32> to vector<8x8xf32>
    %125 = vector.extract_strided_slice %109 {offsets = [7, 0, 0], sizes = [1, 8, 8], strides = [1, 1, 1]} : vector<8x8x8xf32> to vector<1x8x8xf32>
    %126 = vector.shape_cast %125 : vector<1x8x8xf32> to vector<8x8xf32>
    %127 = tpu.concatenate %120, %122, %124, %126 in 1 : vector<8x8xf32>, vector<8x8xf32>, vector<8x8xf32>, vector<8x8xf32> -> vector<8x32xf32>
    %128 = tpu.concatenate %118, %127 in 0 : vector<8x32xf32>, vector<8x32xf32> -> vector<16x32xf32>
    %cst_57 = arith.constant dense<0.000000e+00> : vector<16x32xf32>
    %129 = tpu.matmul %128, %11, %cst_57 {dimension_numbers = #tpu.dot_dimension_numbers<[1], [0], [0], [1], [0, 0, 1, 1], [], []>} : vector<16x32xf32>, vector<32x32xf32>, vector<16x32xf32> -> vector<16x32xf32>
    %130 = vector.broadcast %19 : vector<1x32xf32> to vector<16x32xf32>
    %131 = arith.addf %129, %130 : vector<16x32xf32>
    %132 = arith.addf %3, %131 : vector<16x32xf32>
    %cst_58 = arith.constant dense<0.000000e+00> : vector<16xf32>
    %133 = vector.multi_reduction <add>, %132, %cst_58 [1] : vector<16x32xf32> to vector<16xf32>
    %134 = vector.shape_cast %133 : vector<16xf32> to vector<16x1xf32>
    %cst_59 = arith.constant 3.200000e+01 : f32
    %135 = vector.broadcast %cst_59 : f32 to vector<16x1xf32>
    %136 = arith.divf %134, %135 : vector<16x1xf32>
    %137 = vector.broadcast %136 : vector<16x1xf32> to vector<16x32xf32>
    %138 = arith.subf %132, %137 : vector<16x32xf32>
    %139 = arith.mulf %138, %138 : vector<16x32xf32>
    %cst_60 = arith.constant dense<0.000000e+00> : vector<16xf32>
    %140 = vector.multi_reduction <add>, %139, %cst_60 [1] : vector<16x32xf32> to vector<16xf32>
    %141 = vector.shape_cast %140 : vector<16xf32> to vector<16x1xf32>
    %cst_61 = arith.constant 3.200000e+01 : f32
    %142 = vector.broadcast %cst_61 : f32 to vector<16x1xf32>
    %143 = arith.divf %141, %142 : vector<16x1xf32>
    %144 = vector.broadcast %136 : vector<16x1xf32> to vector<16x32xf32>
    %145 = arith.subf %132, %144 : vector<16x32xf32>
    %cst_62 = arith.constant 9.99999974E-6 : f32
    %146 = vector.broadcast %cst_62 : f32 to vector<16x1xf32>
    %147 = arith.addf %143, %146 : vector<16x1xf32>
    %148 = math.rsqrt %147 : vector<16x1xf32>
    %149 = vector.broadcast %148 : vector<16x1xf32> to vector<16x32xf32>
    %150 = arith.mulf %145, %149 : vector<16x32xf32>
    %151 = vector.broadcast %29 : vector<1x32xf32> to vector<16x32xf32>
    %152 = arith.mulf %150, %151 : vector<16x32xf32>
    %153 = vector.broadcast %31 : vector<1x32xf32> to vector<16x32xf32>
    %154 = arith.addf %152, %153 : vector<16x32xf32>
    %cst_63 = arith.constant dense<0.000000e+00> : vector<16x64xf32>
    %155 = tpu.matmul %154, %21, %cst_63 {dimension_numbers = #tpu.dot_dimension_numbers<[1], [0], [0], [1], [0, 0, 1, 1], [], []>} : vector<16x32xf32>, vector<32x64xf32>, vector<16x64xf32> -> vector<16x64xf32>
    %156 = vector.broadcast %23 : vector<1x64xf32> to vector<16x64xf32>
    %157 = arith.addf %155, %156 : vector<16x64xf32>
    %cst_64 = arith.constant 0.000000e+00 : f32
    %158 = vector.broadcast %cst_64 : f32 to vector<16x64xf32>
    %159 = arith.maximumf %157, %158 : vector<16x64xf32>
    %cst_65 = arith.constant dense<0.000000e+00> : vector<16x32xf32>
    %160 = tpu.matmul %159, %25, %cst_65 {dimension_numbers = #tpu.dot_dimension_numbers<[1], [0], [0], [1], [0, 0, 1, 1], [], []>} : vector<16x64xf32>, vector<64x32xf32>, vector<16x32xf32> -> vector<16x32xf32>
    %161 = vector.broadcast %27 : vector<1x32xf32> to vector<16x32xf32>
    %162 = arith.addf %160, %161 : vector<16x32xf32>
    %163 = arith.addf %154, %162 : vector<16x32xf32>
    %cst_66 = arith.constant dense<0.000000e+00> : vector<16xf32>
    %164 = vector.multi_reduction <add>, %163, %cst_66 [1] : vector<16x32xf32> to vector<16xf32>
    %165 = vector.shape_cast %164 : vector<16xf32> to vector<16x1xf32>
    %cst_67 = arith.constant 3.200000e+01 : f32
    %166 = vector.broadcast %cst_67 : f32 to vector<16x1xf32>
    %167 = arith.divf %165, %166 : vector<16x1xf32>
    %168 = vector.broadcast %167 : vector<16x1xf32> to vector<16x32xf32>
    %169 = arith.subf %163, %168 : vector<16x32xf32>
    %170 = arith.mulf %169, %169 : vector<16x32xf32>
    %cst_68 = arith.constant dense<0.000000e+00> : vector<16xf32>
    %171 = vector.multi_reduction <add>, %170, %cst_68 [1] : vector<16x32xf32> to vector<16xf32>
    %172 = vector.shape_cast %171 : vector<16xf32> to vector<16x1xf32>
    %cst_69 = arith.constant 3.200000e+01 : f32
    %173 = vector.broadcast %cst_69 : f32 to vector<16x1xf32>
    %174 = arith.divf %172, %173 : vector<16x1xf32>
    %175 = vector.broadcast %167 : vector<16x1xf32> to vector<16x32xf32>
    %176 = arith.subf %163, %175 : vector<16x32xf32>
    %cst_70 = arith.constant 9.99999974E-6 : f32
    %177 = vector.broadcast %cst_70 : f32 to vector<16x1xf32>
    %178 = arith.addf %174, %177 : vector<16x1xf32>
    %179 = math.rsqrt %178 : vector<16x1xf32>
    %180 = vector.broadcast %179 : vector<16x1xf32> to vector<16x32xf32>
    %181 = arith.mulf %176, %180 : vector<16x32xf32>
    %182 = vector.broadcast %33 : vector<1x32xf32> to vector<16x32xf32>
    %183 = arith.mulf %181, %182 : vector<16x32xf32>
    %184 = vector.broadcast %35 : vector<1x32xf32> to vector<16x32xf32>
    %185 = arith.addf %183, %184 : vector<16x32xf32>
    %c0_71 = arith.constant 0 : index
    %c0_72 = arith.constant 0 : index
    %186 = vector.load %arg18[%c0_71, %c0_72] : memref<16x32xf32, #tpu.memory_space<vmem>>, vector<16x32xf32>
    tpu.vector_store %arg18[%c0_71, %c0_72], %185 {strides = array<i32>} : memref<16x32xf32, #tpu.memory_space<vmem>>, vector<16x32xf32>,
    return
  }
  func.func @transform_0(%arg0: i32) -> (i32, i32) {
    %c0_i32 = arith.constant 0 : i32
    %c0_i32_0 = arith.constant 0 : i32
    %c0_i32_1 = arith.constant 0 : i32
    return %c0_i32, %c0_i32_0 : i32, i32
  }
  func.func @transform_1(%arg0: i32) -> (i32, i32, i32) {
    %c0_i32 = arith.constant 0 : i32
    %c0_i32_0 = arith.constant 0 : i32
    %c0_i32_1 = arith.constant 0 : i32
    return %arg0, %c0_i32, %c0_i32_0 : i32, i32, i32
  }
  func.func @transform_2(%arg0: i32) -> (i32, i32, i32) {
    %c0_i32 = arith.constant 0 : i32
    %c0_i32_0 = arith.constant 0 : i32
    %c0_i32_1 = arith.constant 0 : i32
    return %arg0, %c0_i32, %c0_i32_0 : i32, i32, i32
  }
  func.func @transform_3(%arg0: i32) -> (i32, i32, i32) {
    %c0_i32 = arith.constant 0 : i32
    %c0_i32_0 = arith.constant 0 : i32
    %c0_i32_1 = arith.constant 0 : i32
    return %arg0, %c0_i32, %c0_i32_0 : i32, i32, i32
  }
  func.func @transform_4(%arg0: i32) -> (i32, i32, i32) {
    %c0_i32 = arith.constant 0 : i32
    %c0_i32_0 = arith.constant 0 : i32
    %c0_i32_1 = arith.constant 0 : i32
    return %arg0, %c0_i32, %c0_i32_0 : i32, i32, i32
  }
  func.func @transform_5(%arg0: i32) -> (i32, i32, i32) {
    %c0_i32 = arith.constant 0 : i32
    %c0_i32_0 = arith.constant 0 : i32
    %c0_i32_1 = arith.constant 0 : i32
    return %arg0, %c0_i32, %c0_i32_0 : i32, i32, i32
  }
  func.func @transform_6(%arg0: i32) -> (i32, i32, i32) {
    %c0_i32 = arith.constant 0 : i32
    %c0_i32_0 = arith.constant 0 : i32
    %c0_i32_1 = arith.constant 0 : i32
    return %arg0, %c0_i32, %c0_i32_0 : i32, i32, i32
  }
  func.func @transform_7(%arg0: i32) -> (i32, i32, i32) {
    %c0_i32 = arith.constant 0 : i32
    %c0_i32_0 = arith.constant 0 : i32
    %c0_i32_1 = arith.constant 0 : i32
    return %arg0, %c0_i32, %c0_i32_0 : i32, i32, i32
  }
  func.func @transform_8(%arg0: i32) -> (i32, i32, i32) {
    %c0_i32 = arith.constant 0 : i32
    %c0_i32_0 = arith.constant 0 : i32
    %c0_i32_1 = arith.constant 0 : i32
    return %arg0, %c0_i32, %c0_i32_0 : i32, i32, i32
  }
  func.func @transform_9(%arg0: i32) -> (i32, i32, i32) {
    %c0_i32 = arith.constant 0 : i32
    %c0_i32_0 = arith.constant 0 : i32
    %c0_i32_1 = arith.constant 0 : i32
    return %arg0, %c0_i32, %c0_i32_0 : i32, i32, i32
  }
  func.func @transform_10(%arg0: i32) -> (i32, i32, i32) {
    %c0_i32 = arith.constant 0 : i32
    %c0_i32_0 = arith.constant 0 : i32
    %c0_i32_1 = arith.constant 0 : i32
    return %arg0, %c0_i32, %c0_i32_0 : i32, i32, i32
  }
  func.func @transform_11(%arg0: i32) -> (i32, i32, i32) {
    %c0_i32 = arith.constant 0 : i32
    %c0_i32_0 = arith.constant 0 : i32
    %c0_i32_1 = arith.constant 0 : i32
    return %arg0, %c0_i32, %c0_i32_0 : i32, i32, i32
  }
  func.func @transform_12(%arg0: i32) -> (i32, i32, i32) {
    %c0_i32 = arith.constant 0 : i32
    %c0_i32_0 = arith.constant 0 : i32
    %c0_i32_1 = arith.constant 0 : i32
    return %arg0, %c0_i32, %c0_i32_0 : i32, i32, i32
  }
  func.func @transform_13(%arg0: i32) -> (i32, i32, i32) {
    %c0_i32 = arith.constant 0 : i32
    %c0_i32_0 = arith.constant 0 : i32
    %c0_i32_1 = arith.constant 0 : i32
    return %arg0, %c0_i32, %c0_i32_0 : i32, i32, i32
  }
  func.func @transform_14(%arg0: i32) -> (i32, i32, i32) {
    %c0_i32 = arith.constant 0 : i32
    %c0_i32_0 = arith.constant 0 : i32
    %c0_i32_1 = arith.constant 0 : i32
    return %arg0, %c0_i32, %c0_i32_0 : i32, i32, i32
  }
  func.func @transform_15(%arg0: i32) -> (i32, i32, i32) {
    %c0_i32 = arith.constant 0 : i32
    %c0_i32_0 = arith.constant 0 : i32
    %c0_i32_1 = arith.constant 0 : i32
    return %arg0, %c0_i32, %c0_i32_0 : i32, i32, i32
  }
  func.func @transform_16(%arg0: i32) -> (i32, i32, i32) {
    %c0_i32 = arith.constant 0 : i32
    %c0_i32_0 = arith.constant 0 : i32
    %c0_i32_1 = arith.constant 0 : i32
    return %arg0, %c0_i32, %c0_i32_0 : i32, i32, i32
  }
  func.func @transform_17(%arg0: i32) -> (i32, i32) {
    %c0_i32 = arith.constant 0 : i32
    %c0_i32_0 = arith.constant 0 : i32
    %c0_i32_1 = arith.constant 0 : i32
    return %c0_i32, %c0_i32_0 : i32, i32
  }
}

</mosaic_0001>

<bundles_post_ra>
// kernel: tpu_custom_call.1
= control target key start
LH: loop header
LB: loop body
LE: loop exit
PB: predicated region body
PF: predicated region fallthrough
CT: control target
= control target key end

     0   :  { %s4321_s0 = inlined_call_operand.hbm [shape: f32[16,32], index: 0, kind: input, shape index: {}]   ;;  %s4322_s1 = inlined_call_operand.vmem [shape: f32[2,32,32], index: 1, kind: input, shape index: {}]   ;;  %s4323_s2 = inlined_call_operand.vmem [shape: f32[2,1,32], index: 2, kind: input, shape index: {}]   ;;  %s4324_s3 = inlined_call_operand.vmem [shape: f32[2,32,32], index: 3, kind: input, shape index: {}]   ;;  %s4325_s4 = inlined_call_operand.vmem [shape: f32[2,1,32], index: 4, kind: input, shape index: {}]   ;;  %s4326_s5 = inlined_call_operand.vmem [shape: f32[2,32,32], index: 5, kind: input, shape index: {}]   ;;  %s4327_s6 = inlined_call_operand.vmem [shape: f32[2,1,32], index: 6, kind: input, shape index: {}]   ;;  %s4328_s7 = inlined_call_operand.hbm [shape: f32[2,32,32], index: 7, kind: input, shape index: {}]   ;;  %s4329_s8 = inlined_call_operand.vmem [shape: f32[2,1,32], index: 8, kind: input, shape index: {}]   ;;  %s4330_s9 = inlined_call_operand.hbm [shape: f32[2,32,64], index: 9, kind: input, shape index: {}]   ;;  %s4331_s10 = inlined_call_operand.vmem [shape: f32[2,1,64], index: 10, kind: input, shape index: {}]   ;;  %s4332_s11 = inlined_call_operand.vmem [shape: f32[2,64,32], index: 11, kind: input, shape index: {}]   ;;  %s4333_s12 = inlined_call_operand.vmem [shape: f32[2,1,32], index: 12, kind: input, shape index: {}]   ;;  %s4334_s13 = inlined_call_operand.vmem [shape: f32[2,1,32], index: 13, kind: input, shape index: {}]   ;;  %s4335_s14 = inlined_call_operand.vmem [shape: f32[2,1,32], index: 14, kind: input, shape index: {}]   ;;  %s4336_s15 = inlined_call_operand.vmem [shape: f32[2,1,32], index: 15, kind: input, shape index: {}]   ;;  %s4337_s16 = inlined_call_operand.vmem [shape: f32[2,1,32], index: 16, kind: input, shape index: {}]   ;;  %s4338_s17 = inlined_call_operand.hbm [shape: f32[16,32], index: 17, kind: output, shape index: {}]  }
   0x1   :  { %4355 = sst [smem:[#allocation18_spill]] %s4321_s0 }
   0x2   :  { %4356 = sst [smem:[#allocation19_spill]] %s4322_s1 }
   0x3   :  { %4357 = sst [smem:[#allocation20_spill]] %s4323_s2 }
   0x4   :  { %4358 = sst [smem:[#allocation21_spill]] %s4324_s3 }
   0x5   :  { %4359 = sst [smem:[#allocation22_spill]] %s4326_s5 }
   0x6   :  { %4360 = sst [smem:[#allocation23_spill]] %s4328_s7 }
   0x7   :  { %4361 = sst [smem:[#allocation24_spill]] %s4330_s9 }
   0x8   :  { %4362 = sst [smem:[#allocation25_spill]] %s4332_s11 }
   0x9   :  { %4363 = sst [smem:[#allocation26_spill]] %s4337_s16 }
   0xa   :  { %4364 = sst [smem:[#allocation27_spill]] %s4338_s17 }
   0xb   :  { %22 = vsyncpa [#allocation3], 0 }
   0xc   :  { %23 = vsyncpa [#allocation6], 0 }
   0xd   :  { %25 = vsyncpa [#allocation6 + $0x1], 0 }
   0xe   :  { %26 = vsyncpa [#allocation4], 0  ;;  %s3800_s24 = smov 0   ;;  %s3802_s25 = smov 0  }
   0xf   :  { %s3804_s26 = smov 0   ;;  %s3806_s27 = smov 0  }
  0x10 LB: > { %4365 = sst [smem:[#allocation12_spill]] %s3685_s25  ;;  %s3821_s28 = sadd.s32 1, %s3693_s27   ;;  %s3693_s27 = sphi %s3806_s27, %s4405_s27   ;;  %s3689_s26 = sphi %s3804_s26, %s4408_s26   ;;  %s3685_s25 = sphi %s3802_s25, %s4407_s25   ;;  %s3681_s24 = sphi %s3800_s24, %s4406_s24  }
  0x11   : > { %4366 = sst [smem:[#allocation13_spill]] %s3689_s26  ;;  %s216_s29 = sadd.s32 1, %s3689_s26 }
  0x12   : > { %4367 = sst [smem:[#allocation14_spill]] %s3821_s28  ;;  %s213_s0 = ssub.s32 %s3693_s27, %s3821_s28 }
  0x13   : > { %p223_p0 = scmp.ne.s32.totalorder %s3689_s26, %s3685_s25  ;;  %p214_p1 = scmp.eq.s32.totalorder %s213_s0, 0 }
  0x14   : > { %p224_p2 = scmp.eq.s32.totalorder %s3693_s27, 0  ;;  %p3448_p4 = scmp.lt.s32.totalorder %s3693_s27, 2 }
  0x15   : > { %s3830_s30 = scalar_select %p214_p1, %s3689_s26, %s216_s29  }
  0x16   : > { %p225_p3 = por %p224_p2, %p223_p0  ;;  %s563_s18 = sand.u32 1, %s3693_s27  }
  0x17   : > { %4368 = sst [smem:[#allocation15_spill]] %s3830_s30  ;;  %s565_s19 = sand.u32 1, %s3689_s26  }
  0x18   : > { %s3835_s1 = sshll.u32 %s565_s19, 5  ;;  %s4341_s20 = sshll.u32 %s3693_s27, 9 }
  0x19   : > { %s4369_s7 = sld [smem:[#allocation23_spill]]  ;;  %s567_s29 = scalar_lea.vmem [#allocation5], %s3835_s1 }
  0x1a   : > { %s574_s0 = sshll.u32 %s567_s29, 4  ;;  %p3846_p5 = pnand %p3448_p4, %p225_p3  ;;  %s3850_s0 = int_to_ptr.vmem [resolvable:$true] %s574_s0 }
  0x1b   : > { %s3852_s19 = scalar_lea.sflag [#allocation6], %s563_s18 }
  0x1c   : > { %p3539_p7 = pneg %p3846_p5 }
  0x1f   : > { %s3843_s23 = scalar_lea.hbm %s4369_s7, %s4341_s20  ;;  %s3542_s29 = scalar_lea.hbm %s4369_s7, 1024 }
  0x20   : > { %s3537_s26 = scalar_lea.hbm %s3843_s23, 512  ;;  %p3543_p10 = scmp.lt.u32.totalorder %s3843_s23, %s4369_s7 }
  0x21   : > { %p3538_p6 = scmp.ne.s32.totalorder %s3843_s23, %s3537_s26  ;;  %p3544_p11 = scmp.lt.u32.totalorder %s3542_s29, %s3537_s26 }
  0x22   : > { %p3546_p13 = scmp.lt.u32.totalorder %s3537_s26, %s3843_s23 }
  0x23   : > { %p3540_p8 = pnand %p3539_p7, %p3538_p6  ;;  %p3545_p12 = por %p3544_p11, %p3543_p10 }
  0x25   : > { %p3541_p9 = pneg %p3540_p8  ;;  %p3547_p0 = por %p3546_p13, %p3545_p12 }
  0x27   : > { %p3548_p1 = pnand %p3547_p0, %p3541_p9 }
  0x29   : > { %3551 = shalt.err (!%p3548_p1)
}
  0x2a   : > { %s3552_s18 = scalar_lea.vmem %s3850_s0, 512  ;;  %s3695_s21 = smov [#allocation5]  }
  0x2b   : > { %p3553_p2 = scmp.ne.s32.totalorder %s3850_s0, %s3552_s18  ;;  %s3557_s22 = sshll.u32 %s3695_s21, 4  ;;  %s3558_s22 = int_to_ptr.vmem [resolvable:$false] %s3557_s22 }
  0x2c   : > { %s3559_s28 = scalar_lea.vmem %s3558_s22, 1024  ;;  %p3560_p6 = scmp.lt.s32.totalorder %s3850_s0, %s3558_s22 }
  0x2d   : > { %p3555_p3 = pnand %p3553_p2, %p3539_p7  ;;  %p3561_p8 = scmp.lt.s32.totalorder %s3559_s28, %s3552_s18 }
  0x2f   : > { %p3556_p4 = pneg %p3555_p3  ;;  %p3562_p10 = por %p3561_p8, %p3560_p6 }
  0x31   : > { %p3563_p11 = pnand %p3562_p10, %p3556_p4 }
  0x33   : > { %3566 = shalt.err (!%p3563_p11)
}
  0x34   : > { %s4345_s26 = smov 128   ;;  %s3697_s20 = smov 8  }
  0x35   : > { %3443 = dma.hbm_to_vmem [thread:$0]  (!%p3846_p5), %s3843_s23, 512, %s3850_s0, %s3852_s19, %s4345_s26, %s4345_s26, %s3697_s20  }
  0x36   : > { %s4371_s29 = sshll.u32 %s3693_s27, 9  ;;  %s4372_s9 = sld [smem:[#allocation24_spill]] }
  0x37   : > { %s594_s28 = scalar_lea.vmem [#allocation7], %s3835_s1  ;;  %s3892_s17 = sadd.s32 4294967295, %s3693_s27  }
  0x38   : > { %s601_s7 = sshll.u32 %s594_s28, 4  ;;  %4373 = sst [smem:[#allocation16_spill]] %s3892_s17  ;;  %s3906_s7 = int_to_ptr.vmem [resolvable:$true] %s601_s7 }
  0x39   : > { %p229_p9 = scmp.ne.s32.totalorder %s3685_s25, %s3681_s24  ;;  %p4347_p12 = scmp.eq.s32.totalorder %s3892_s17, 0 }
  0x3a   : > { %p3064_p13 = scmp.ge.s32.totalorder %s3693_s27, 1  ;;  %p495_p0 = scmp.lt.s32.totalorder %s3693_s27, 3 }
  0x3b   : > { %p3902_p2 = por %p4347_p12, %p229_p9  ;;  %s3698_s0 = smov [#allocation2]  }
  0x3c   : > { %s3888_s22 = scalar_lea.hbm %s4372_s9, %s4371_s29  ;;  %p3908_p3 = pnand %p3064_p13, %p495_p0 }
  0x3d   : > { %s4374_s23 = scalar_select %p3902_p2, 1, 0 }
  0x3e   : > { %s4375_s1 = scalar_select %p3908_p3, 1, 0 }
  0x3f   : > { %s3912_s24 = sshll.u32 %s3698_s0, 4  ;;  %s3567_s27 = scalar_lea.hbm %s3888_s22, 512  ;;  %s508_s24 = int_to_ptr.vmem [resolvable:$true] %s3912_s24 }
  0x40   : > { %p3568_p6 = scmp.ne.s32.totalorder %s3888_s22, %s3567_s27  ;;  %s3572_s21 = scalar_lea.hbm %s4372_s9, 1024 }
  0x41   : > { %p3573_p11 = scmp.lt.u32.totalorder %s3888_s22, %s4372_s9  ;;  %p3574_p9 = scmp.lt.u32.totalorder %s3572_s21, %s3567_s27 }
  0x42   : > { %p3570_p8 = pnand %p3568_p6, %p3539_p7  ;;  %p3576_p0 = scmp.lt.u32.totalorder %s3567_s27, %s3888_s22 }
  0x43   : > { %p3575_p13 = por %p3574_p9, %p3573_p11 }
  0x44   : > { %p3571_p10 = pneg %p3570_p8 }
  0x45   : > { %p3577_p1 = por %p3576_p0, %p3575_p13 }
  0x47   : > { %p3578_p12 = pnand %p3577_p1, %p3571_p10 }
  0x49   : > { %3581 = shalt.err (!%p3578_p12)
}
  0x4a   : > { %s3582_s0 = scalar_lea.vmem %s3906_s7, 512  ;;  %s3699_s29 = smov [#allocation7]  }
  0x4b   : > { %p3583_p6 = scmp.ne.s32.totalorder %s3906_s7, %s3582_s0  ;;  %s3587_s18 = sshll.u32 %s3699_s29, 4  ;;  %s3588_s18 = int_to_ptr.vmem [resolvable:$false] %s3587_s18 }
  0x4c   : > { %s3589_s26 = scalar_lea.vmem %s3588_s18, 1024  ;;  %p3590_p2 = scmp.lt.s32.totalorder %s3906_s7, %s3588_s18 }
  0x4d   : > { %p3585_p8 = pnand %p3583_p6, %p3539_p7  ;;  %p3591_p11 = scmp.lt.s32.totalorder %s3589_s26, %s3582_s0 }
  0x4f   : > { %p3586_p4 = pneg %p3585_p8  ;;  %p3592_p9 = por %p3591_p11, %p3590_p2 }
  0x51   : > { %p3593_p13 = pnand %p3592_p9, %p3586_p4 }
  0x53   : > { %3596 = shalt.err (!%p3593_p13)
}
  0x54   : > { %s4376_s27 = smov 128   ;;  %p4377_p7 = scmp.eq.s32.totalorder %s3892_s17, 0 }
  0x55   : > { %3446 = dma.hbm_to_vmem [thread:$0]  (!%p3846_p5), %s3888_s22, 512, %s3906_s7, %s3852_s19, %s4376_s27, %s4376_s27, %s3697_s20  }
  0x56   : > { %p4378_p12 = pneg %p3908_p3  ;;  %s4380_s0 = sld [smem:[#allocation18_spill]] }
  0x58   : > { %p3949_p1 = pnand %p4378_p12, %p4377_p7 }
  0x5a   : > { %p3599_p4 = pneg %p3949_p1 }
  0x5c   : > { %s3597_s29 = scalar_lea.hbm %s4380_s0, 256 }
  0x5d   : > { %p3598_p2 = scmp.ne.s32.totalorder %s4380_s0, %s3597_s29  ;;  %p3604_p0 = scmp.lt.u32.totalorder %s3597_s29, %s4380_s0 }
  0x5f   : > { %p3600_p5 = pnand %p3599_p4, %p3598_p2 }
  0x61   : > { %p3601_p10 = pneg %p3600_p5 }
  0x63   : > { %p3606_p6 = pnand %p3604_p0, %p3601_p10 }
  0x65   : > { %3609 = shalt.err (!%p3606_p6)
}
  0x66   : > { %s3610_s22 = scalar_lea.vmem %s508_s24, 256  ;;  %p3618_p13 = scmp.lt.s32.totalorder %s508_s24, %s508_s24 }
  0x67   : > { %p3611_p8 = scmp.ne.s32.totalorder %s508_s24, %s3610_s22  ;;  %p3619_p7 = scmp.lt.s32.totalorder %s3610_s22, %s3610_s22 }
  0x69   : > { %p3613_p11 = pnand %p3611_p8, %p3599_p4  ;;  %p3620_p12 = por %p3619_p7, %p3618_p13 }
  0x6b   : > { %p3614_p9 = pneg %p3613_p11 }
  0x6d   : > { %p3621_p3 = pnand %p3620_p12, %p3614_p9 }
  0x6f   : > { %3624 = shalt.err (!%p3621_p3)
}
  0x70   : > { %3439 = dma.hbm_to_vmem [thread:$0]  (!%p3949_p1), %s4380_s0, 256, %s508_s24, [#allocation3], %s4376_s27, %s4376_s27, %s3697_s20  }
  0x71   : > { %p4381_p2 = scmp.ne.s32.totalorder %s4375_s1, 0 }
  0x73   : > { %657 = sbr.rel (%p4381_p2) target bundleno = 2677 (0xa75), region = 88 }
  0x7a   : > { %p4382_p4 = scmp.eq.s32.totalorder %s3892_s17, 0 }
  0x7c   : > { %3668 = dma.done.wait (%p4382_p4), [#allocation3], 256   ;;  %p4383_p5 = pmov %p4382_p4 }
  0x7d   : > { %s663_s21 = sand.u32 1, %s3892_s17   ;;  %s665_s29 = sand.u32 1, %s3685_s25  }
  0x7e   : > { %3670 = vsyncadd (%p4383_p5), [#allocation3], 4294967040  ;;  %s3075_s18 = sshll.u32 %s665_s29, 5  ;;  %s664_s26 = scalar_lea.sflag [#allocation6], %s663_s21 }
  0x7f   : > { %s3980_s7 = scalar_lea.vmem [#allocation5], %s3075_s18  ;;  %p4385_p3 = scmp.ne.s32.totalorder %s4374_s23, 0 }
  0x80   : > { %4384 = sst [smem:[#allocation17_spill]] %s3980_s7 }
  0x81   : > { %3672 = dma.done.wait (%p4385_p3), %s664_s26, 1024  }
  0x82   : > { %3674 = vsyncadd (%p4385_p3), %s664_s26, 4294966272  ;;  %p777_p1 = scmp.lt.s32.totalorder %s3892_s17, 1  ;;  %s4387_s28 = sld [smem:[#allocation19_spill]] }
  0x83   : > { %s4388_s3 = sld [smem:[#allocation21_spill]]  ;;  %s4389_s5 = sld [smem:[#allocation22_spill]] }
  0x84   : > { %s3988_s20 = scalar_select %p777_p1, %s3892_s17, 1 }
  0x85   : > { %s4390_s11 = sld [smem:[#allocation25_spill]]  ;;  %s4392_s17 = sld [smem:[#allocation16_spill]] }
  0x86   : > { %s3138_s1 = sshll.u32 %s3988_s20, 5  ;;  %s3141_s2 = sshll.u32 %s3988_s20, 6 }
  0x87   : > { %s817_s27 = scalar_lea.vmem %s4334_s13, %s3988_s20 }
  0x88   : > { %s781_s30 = scalar_lea.vmem %s4387_s28, %s3138_s1  ;;  %s820_s28 = scalar_lea.vmem %s4335_s14, %s3988_s20 }
  0x89   : > { %s4001_s26 = scalar_lea.vmem %s4388_s3, %s3138_s1  ;;  %s4010_s16 = scalar_lea.vmem %s4389_s5, %s3138_s1 }
  0x8a   : > { %s814_s1 = scalar_lea.vmem %s4333_s12, %s3988_s20  ;;  %s823_s3 = scalar_lea.vmem %s4336_s15, %s3988_s20 }
  0x8b   : > { %s4028_s25 = scalar_lea.vmem %s4390_s11, %s3141_s2  ;;  %s4391_s2 = sld [smem:[#allocation26_spill]] }
  0x8c   : > { %s4050_s11 = scalar_lea.vmem [#allocation7], %s3075_s18  ;;  %p4393_p10 = scmp.ne.s32.totalorder %s4392_s17, 0 }
  0x8d   : > { %v831_v0 = vld [vmem:[#allocation2] sm:$0xff] (!%p4393_p10)  ;;  %vm833_vm0 = vcmask (!%p4393_p10), 261120   ;;  %v832_v1 = vld [vmem:[#allocation2 + $0x8] sm:$0xff] (!%p4393_p10) }
  0x8e   : > { %830 = sbr.rel (%p4393_p10) target bundleno = 149 (0x95), region = 104  ;;  %834 = vst.msk [vmem:[#allocation8] sm:$0xff] (!%p4393_p10), %vm833_vm0, %v831_v0  ;;  %835 = vst.msk [vmem:[#allocation8 + $0x8] sm:$0xff] (!%p4393_p10), %vm833_vm0, %v832_v1 }
  0x91   : > { %s826_s0 = scalar_lea.vmem %s4391_s2, %s3988_s20 }
  0x95 PF: > { %v838_v2 = vld [vmem:[%s781_s30] sm:$0xff]  ;;  %v839_v3 = vld [vmem:[%s781_s30 + $0x8] sm:$0xff]  ;;  %v840_v4 = vld [vmem:[%s781_s30 + $0x10] sm:$0xff]  ;;  %vm882_vm1 = vcmask 261120   ;;  %v3700_v16 = vmov 0.0   ;;  %vm3701_vm2 = vmmov 0   ;;  %s4396_s19 = scalar_lea.vmem %s4325_s4, %s3988_s20  ;;  %s4397_s9 = scalar_lea.vmem %s4327_s6, %s3988_s20 }
  0x96   : > { %v3368_v5 = vpack.c.bf16 %v839_v3, %v838_v2  ;;  %v841_v6 = vld [vmem:[%s781_s30 + $0x18] sm:$0xff]  ;;  %v4054_v7 = vld [vmem:[#allocation8] sm:$0xff]  ;;  %v842_v9 = vld [vmem:[%s4001_s26] sm:$0xff]  ;;  %s4394_s30 = sld [smem:[#allocation20_spill]]  ;;  %s3703_s7 = smov 120   ;;  %vm1174_vm3 = vcmask 64512  }
  0x97   : > { %v3372_v8 = vpack.c.bf16 %v841_v6, %v840_v4  ;;  %3222 = vmatprep.mubr.msk.f32.mxu1 %vm882_vm1, %v4054_v7  ;;  %v843_v10 = vld [vmem:[%s4001_s26 + $0x8] sm:$0xff]  ;;  %3244 = vmatprep.mubr.msk.f32.mxu0 %vm882_vm1, %v4054_v7  ;;  %v844_v12 = vld [vmem:[%s4001_s26 + $0x10] sm:$0xff]  ;;  %v845_v13 = vld [vmem:[%s4001_s26 + $0x18] sm:$0xff]  ;;  %s3704_s22 = smov 112   ;;  %s4398_s2 = sld [smem:[#allocation17_spill]]  ;;  %vm2460_vm4 = vcmask 130048  }
  0x98   : > { %3369 = vmatprep.subr.bf16.mxu1 %v3368_v5  ;;  %v3376_v11 = vpack.c.bf16 %v843_v10, %v842_v9  ;;  %v4064_v14 = vld [vmem:[#allocation8 + $0x8] sm:$0xff]  ;;  %v3380_v15 = vpack.c.bf16 %v845_v13, %v844_v12  ;;  %v846_v17 = vld [vmem:[%s4010_s16] sm:$0xff]  ;;  %v847_v18 = vld [vmem:[%s4010_s16 + $0x8] sm:$0xff]  ;;  %s3705_s17 = smov 8   ;;  %s3706_s5 = smov 16   ;;  %vm2462_vm5 = vcmask 195584  }
  0x99   : > { %3371 = vmatpush3.bf16.msra.mxu1 %v3368_v5  ;;  %v848_v19 = vld [vmem:[%s4010_s16 + $0x10] sm:$0xff]  ;;  %v3384_v20 = vpack.c.bf16 %v847_v18, %v846_v17  ;;  %v849_v21 = vld [vmem:[%s4010_s16 + $0x18] sm:$0xff]  ;;  %s3702_s16 = smov 104   ;;  %v3089_v27 = vld [vmem:[%s4396_s19] ss:$0 sm:$0xff]  ;;  %s3707_s18 = smov 24  }
  0x9a   : > { %3373 = vmatprep.subr.bf16.mxu1 %v3372_v8  ;;  %v3388_v22 = vpack.c.bf16 %v849_v21, %v848_v19  ;;  %v3092_v33 = vld [vmem:[%s4397_s9] ss:$0 sm:$0xff]  ;;  %vm2706_vm6 = vcmask 523264  }
  0x9b   : > { %3385 = vmatprep.subr.bf16.mxu0 %v3384_v20 }
  0x9c   : > { %3387 = vmatpush3.bf16.msra.mxu0 %v3384_v20  ;;  %s4395_s26 = scalar_lea.vmem %s4394_s30, %s3988_s20 }
  0x9d   : > { %3375 = vmatpush3.bf16.msra.mxu1 %v3372_v8  ;;  %3389 = vmatprep.subr.bf16.mxu0 %v3388_v22  ;;  %v3086_v23 = vld [vmem:[%s4395_s26] ss:$0 sm:$0xff] }
  0x9e   : > { %3377 = vmatprep.subr.bf16.mxu1 %v3376_v11 }
  0xa0   : > { %3223 = vmatmul.mubr.msk.f32.vlgmr.msra.gmra.mrb[0].mxu1 %vm882_vm1, %v4064_v14  ;;  %3391 = vmatpush3.bf16.msra.mxu0 %v3388_v22 }
  0xa1   : > { %3379 = vmatpush3.bf16.msra.mxu1 %v3376_v11  ;;  %3233 = vmatprep.mubr.msk.f32.mxu1 %vm882_vm1, %v4054_v7 }
  0xa2   : > { %3381 = vmatprep.subr.bf16.mxu1 %v3380_v15  ;;  %3257 = vmatprep.subr.mxu0 %v3700_v16 }
  0xa3   : > { %3245 = vmatmul.mubr.msk.f32.vlgmr.msra.gmra.mrb[0].mxu0 %vm882_vm1, %v4064_v14 }
  0xa4   : > { %3259 = vmatprep.mubr.msk.f32.mxu0 %vm3701_vm2, %v3700_v16 }
  0xa5   : > { %3383 = vmatpush3.bf16.msra.mxu1 %v3380_v15 }
  0xa6   : > { %3247 = vmatprep.subr.mxu1 %v3700_v16 }
  0xa8   : > { %3234 = vmatmul.mubr.msk.f32.vlgmr.msra.gmra.mrb[2].mxu1 %vm882_vm1, %v4064_v14 }
  0xa9   : > { %3249 = vmatprep.mubr.msk.f32.mxu1 %vm3701_vm2, %v3700_v16 }
 0x173   : > { %v3224_v24 = vpop.f32.mrb[0].mxu1 }
 0x174   : > { %v955_v25 = vpop.f32.mrb[1].mxu1  ;;  %v961_v31 = vadd.f32 %v3224_v24, %v3086_v23 }
 0x175   : > { %v956_v26 = vadd.f32 %v3086_v23, %v955_v25 }
 0x176   : > { %v3246_v36 = vpop.f32.mrb[0].mxu0 }
 0x177   : > { %1131 = vrot.lane.b32.xlu1 %v956_v26, %s3702_s16  ;;  %1127 = vrot.lane.b32.xlu0 %v956_v26, %s3703_s7  ;;  %v4116_v37 = vadd.f32 %v3246_v36, %v3092_v33  ;;  %v1117_v38 = vpop.f32.mrb[1].mxu0 }
 0x178   : > { %v1118_v47 = vadd.f32 %v3092_v33, %v1117_v38 }
 0x17b   : > { %v3235_v28 = vpop.f32.mrb[2].mxu1 }
 0x17c   : > { %v1036_v29 = vpop.f32.mrb[3].mxu1  ;;  %v1042_v32 = vadd.f32 %v3235_v28, %v3089_v27 }
 0x17d   : > { %v1037_v30 = vadd.f32 %v3089_v27, %v1036_v29 }
 0x17f   : > { %3248 = vmatpush3.xpose.msk.msra.mxu1 %vm1174_vm3, %v1037_v30  ;;  %1143 = vrot.lane.b32.xlu1 %v1037_v30, %s3704_s22 }
 0x180   : > { %1141 = vrot.lane.b32.xlu0 %v1037_v30, %s3703_s7  ;;  %3252 = vmatprep.subr.mxu1 %v3700_v16 }
 0x182   : > { %3250 = vmatmul.mubr.msk.f32.vlgmr.msra.gmra.mrb[4].mxu1 %vm1174_vm3, %v956_v26 }
 0x183   : > { %1145 = vrot.lane.b32.xlu1 %v1037_v30, %s3702_s16  ;;  %3254 = vmatprep.mubr.msk.f32.mxu1 %vm3701_vm2, %v3700_v16 }
 0x184   : > { %1129 = vrot.lane.b32.xlu0 %v956_v26, %s3704_s22 }
 0x187   : > { %1134 = vrot.lane.b32.xlu1 %v961_v31, %s3703_s7 }
 0x188   : > { %1148 = vrot.lane.b32.xlu0 %v1042_v32, %s3703_s7 }
 0x18b   : > { %1152 = vrot.lane.b32.xlu1 %v1042_v32, %s3702_s16 }
 0x18c   : > { %1150 = vrot.lane.b32.xlu0 %v1042_v32, %s3704_s22 }
 0x18f   : > { %1138 = vrot.lane.b32.xlu1 %v961_v31, %s3702_s16 }
 0x190   : > { %1136 = vrot.lane.b32.xlu0 %v961_v31, %s3704_s22 }
 0x1e9   : > { %v1132_v34 = vpop.permute.xlu1 %1131  ;;  %v1128_v35 = vpop.permute.xlu0 %1127 }
 0x1f1   : > { %v1144_v39 = vpop.permute.xlu1 %1143 }
 0x1f2   : > { %v1142_v40 = vpop.permute.xlu0 %1141  ;;  %3258 = vmatpush3.xpose.msk.msra.mxu0 %vm1174_vm3, %v1144_v39 }
 0x1f3   : > { %3253 = vmatpush3.xpose.msk.msra.mxu1 %vm1174_vm3, %v1142_v40  ;;  %3267 = vmatprep.subr.mxu0 %v3700_v16 }
 0x1f4   : > { %3262 = vmatprep.subr.mxu1 %v3700_v16 }
 0x1f5   : > { %v1146_v41 = vpop.permute.xlu1 %1145 }
 0x1f6   : > { %v1130_v42 = vpop.permute.xlu0 %1129  ;;  %3255 = vmatmul.mubr.msk.f32.vlgmr.msra.gmra.mrb[6].mxu1 %vm1174_vm3, %v1128_v35 }
 0x1f7   : > { %3260 = vmatmul.mubr.msk.f32.vlgmr.msra.gmra.mrb[2].mxu0 %vm1174_vm3, %v1130_v42  ;;  %3263 = vmatpush3.xpose.msk.msra.mxu1 %vm1174_vm3, %v1146_v41 }
 0x1f8   : > { %3268 = vmatpush3.xpose.msk.msra.mxu0 %vm1174_vm3, %v1042_v32  ;;  %3264 = vmatprep.mubr.msk.f32.mxu1 %vm3701_vm2, %v3700_v16 }
 0x1f9   : > { %v1135_v43 = vpop.permute.xlu1 %1134  ;;  %3269 = vmatprep.mubr.msk.f32.mxu0 %vm3701_vm2, %v3700_v16  ;;  %3272 = vmatprep.subr.mxu1 %v3700_v16 }
 0x1fa   : > { %v1149_v44 = vpop.permute.xlu0 %1148  ;;  %3265 = vmatmul.mubr.msk.f32.vlgmr.msra.gmra.mrb[8].mxu1 %vm1174_vm3, %v1132_v34  ;;  %3277 = vmatprep.subr.mxu0 %v3700_v16 }
 0x1fb   : > { %3270 = vmatmul.mubr.msk.f32.vlgmr.msra.gmra.mrb[4].mxu0 %vm1174_vm3, %v961_v31  ;;  %3273 = vmatpush3.xpose.msk.msra.mxu1 %vm1174_vm3, %v1149_v44 }
 0x1fc   : > { %3274 = vmatprep.mubr.msk.f32.mxu1 %vm3701_vm2, %v3700_v16  ;;  %3282 = vmatprep.subr.mxu1 %v3700_v16 }
 0x1fd   : > { %v1153_v45 = vpop.permute.xlu1 %1152  ;;  %3279 = vmatprep.mubr.msk.f32.mxu0 %vm3701_vm2, %v3700_v16 }
 0x1fe   : > { %v1151_v46 = vpop.permute.xlu0 %1150  ;;  %3275 = vmatmul.mubr.msk.f32.vlgmr.msra.gmra.mrb[10].mxu1 %vm1174_vm3, %v1135_v43 }
 0x1ff   : > { %3278 = vmatpush3.xpose.msk.msra.mxu0 %vm1174_vm3, %v1151_v46  ;;  %3283 = vmatpush3.xpose.msk.msra.mxu1 %vm1174_vm3, %v1153_v45 }
 0x200   : > { %3284 = vmatprep.mubr.msk.f32.mxu1 %vm3701_vm2, %v3700_v16  ;;  %3287 = vmatprep.subr.mxu0 %v3700_v16 }
 0x201   : > { %v1139_v48 = vpop.permute.xlu1 %1138  ;;  %3292 = vmatprep.subr.mxu1 %v3700_v16 }
 0x202   : > { %v1137_v49 = vpop.permute.xlu0 %1136  ;;  %3285 = vmatmul.mubr.msk.f32.vlgmr.msra.gmra.mrb[12].mxu1 %vm1174_vm3, %v1139_v48 }
 0x203   : > { %3280 = vmatmul.mubr.msk.f32.vlgmr.msra.gmra.mrb[6].mxu0 %vm1174_vm3, %v1137_v49  ;;  %3294 = vmatprep.mubr.msk.f32.mxu1 %vm3701_vm2, %v3700_v16 }
 0x204   : > { %3288 = vmatpush3.msra.mxu0 %v1118_v47  ;;  %3289 = vmatprep.mubr.msk.f32.mxu0 %vm3701_vm2, %v3700_v16 }
 0x205   : > { %3297 = vmatprep.subr.mxu0 %v3700_v16 }
 0x255   : > { %v1245_v50 = vpop.f32.mrb[4].mxu1 }
 0x256   : > { %v1767_v51 = vmul.f32 0.35355338, %v1245_v50  ;;  %v3251_v52 = vpop.f32.mrb[5].mxu1 }
 0x258   : > { %v1775_v53 = vsel %vm1174_vm3, %v1767_v51, -inf }
 0x259   : > { %1776 = vmax.xlane.f32.xlu0 %v1775_v53 }
 0x2c9   : > { %v1319_v54 = vpop.f32.mrb[6].mxu1 }
 0x2ca   : > { %v1768_v55 = vmul.f32 0.35355338, %v1319_v54  ;;  %v3256_v56 = vpop.f32.mrb[7].mxu1  ;;  %v1393_v57 = vpop.f32.mrb[2].mxu0 }
 0x2cb   : > { %v1769_v58 = vmul.f32 0.35355338, %v1393_v57  ;;  %v3261_v59 = vpop.f32.mrb[3].mxu0 }
 0x2cc   : > { %v1778_v60 = vsel %vm1174_vm3, %v1768_v55, -inf }
 0x2cd   : > { %1779 = vmax.xlane.f32.xlu1 %v1778_v60  ;;  %v1467_v61 = vpop.f32.mrb[8].mxu1  ;;  %v1781_v62 = vsel %vm1174_vm3, %v1769_v58, -inf }
 0x2ce   : > { %v1770_v63 = vmul.f32 0.35355338, %v1467_v61  ;;  %v1541_v0 = vpop.f32.mrb[4].mxu0  ;;  %1782 = vmax.xlane.f32.xlu0 %v1781_v62  ;;  %v3266_v1 = vpop.f32.mrb[9].mxu1 }
 0x2cf   : > { %v1771_v2 = vmul.f32 0.35355338, %v1541_v0  ;;  %v3271_v3 = vpop.f32.mrb[5].mxu0 }
 0x2d0   : > { %v1784_v4 = vsel %vm1174_vm3, %v1770_v63, -inf }
 0x2d1   : > { %v1615_v5 = vpop.f32.mrb[10].mxu1  ;;  %v1787_v6 = vsel %vm1174_vm3, %v1771_v2, -inf }
 0x2d2   : > { %v1772_v8 = vmul.f32 0.35355338, %v1615_v5  ;;  %1788 = vmax.xlane.f32.xlu1 %v1787_v6  ;;  %1785 = vmax.xlane.f32.xlu0 %v1784_v4  ;;  %v3276_v9 = vpop.f32.mrb[11].mxu1 }
 0x2d4   : > { %v1790_v10 = vsel %vm1174_vm3, %v1772_v8, -inf }
 0x2d5   : > { %v1763_v11 = vpop.f32.mrb[12].mxu1 }
 0x2d6   : > { %v1689_v12 = vpop.f32.mrb[6].mxu0  ;;  %1791 = vmax.xlane.f32.xlu0 %v1790_v10  ;;  %v1774_v13 = vmul.f32 0.35355338, %v1763_v11  ;;  %v3286_v15 = vpop.f32.mrb[13].mxu1 }
 0x2d7   : > { %v1773_v17 = vmul.f32 0.35355338, %v1689_v12  ;;  %v3281_v18 = vpop.f32.mrb[7].mxu0 }
 0x2d8   : > { %v1796_v19 = vsel %vm1174_vm3, %v1774_v13, -inf }
 0x2d9   : > { %v1793_v20 = vsel %vm1174_vm3, %v1773_v17, -inf }
 0x2da   : > { %1794 = vmax.xlane.f32.xlu1 %v1793_v20  ;;  %1797 = vmax.xlane.f32.xlu0 %v1796_v19 }
 0x2e6   : > { %v1777_v21 = vpop.xlane.xlu0 %1776 }
 0x2e7   : > { %v1799_v22 = vsub.f32 %v1767_v51, %v1777_v21 }
 0x2e9   : > { %v1807_v23 = vmul.f32 1.442695, %v1799_v22 }
 0x2eb   : > { %1155 = vrot.lane.b32.xlu1 %v1118_v47, %s3703_s7  ;;  %3497 = vpow2.f32 %v1807_v23 }
 0x2ef   : > { %1161 = vrot.lane.b32.xlu1 %v1118_v47, %s3702_s16 }
 0x2f0   : > { %1158 = vrot.lane.b32.xlu0 %v1118_v47, %s3704_s22 }
 0x2f3   : > { %1165 = vrot.lane.b32.xlu1 %v4116_v37, %s3703_s7 }
 0x2f5   : > { %v3498_v24 = vpop.eup %3497 }
 0x2f6   : > { %v1823_v25 = vsel %vm1174_vm3, %v3498_v24, 0.0 }
 0x317   : > { %1824 = vadd.xlane.f32.xlu1 %v1823_v25 }
 0x35a   : > { %v1780_v26 = vpop.xlane.xlu1 %1779 }
 0x35b   : > { %v1800_v27 = vsub.f32 %v1768_v55, %v1780_v26  ;;  %v1783_v28 = vpop.xlane.xlu0 %1782 }
 0x35c   : > { %v1801_v29 = vsub.f32 %v1769_v58, %v1783_v28 }
 0x35d   : > { %v1809_v30 = vmul.f32 1.442695, %v1800_v27 }
 0x35e   : > { %v1811_v31 = vmul.f32 1.442695, %v1801_v29 }
 0x35f   : > { %3499 = vpow2.f32 %v1809_v30  ;;  %v1789_v32 = vpop.xlane.xlu1 %1788  ;;  %v1786_v33 = vpop.xlane.xlu0 %1785 }
 0x360   : > { %3501 = vpow2.f32 %v1811_v31  ;;  %v1803_v34 = vsub.f32 %v1771_v2, %v1789_v32  ;;  %v1802_v35 = vsub.f32 %v1770_v63, %v1786_v33  ;;  %v850_v32 = vld [vmem:[%s4398_s2] sm:$0xff]  ;;  %v851_v33 = vld [vmem:[%s4398_s2 + $0x8] sm:$0xff] }
 0x362   : > { %v1815_v36 = vmul.f32 1.442695, %v1803_v34  ;;  %v1813_v38 = vmul.f32 1.442695, %v1802_v35  ;;  %v3392_v34 = vpack.c.bf16 %v851_v33, %v850_v32  ;;  %v852_v35 = vld [vmem:[%s4398_s2 + $0x10] sm:$0xff]  ;;  %v868_v32 = vld [vmem:[%s4028_s25 + $0x28] sm:$0xff] }
 0x363   : > { %v1792_v39 = vpop.xlane.xlu0 %1791 }
 0x364   : > { %3503 = vpow2.f32 %v1815_v36  ;;  %v1804_v40 = vsub.f32 %v1772_v8, %v1792_v39  ;;  %v853_v36 = vld [vmem:[%s4398_s2 + $0x18] sm:$0xff] }
 0x365   : > { %3505 = vpow2.f32 %v1813_v38  ;;  %v3396_v38 = vpack.c.bf16 %v853_v36, %v852_v35 }
 0x366   : > { %v1817_v41 = vmul.f32 1.442695, %v1804_v40 }
 0x367   : > { %v1795_v42 = vpop.xlane.xlu1 %1794  ;;  %v1798_v43 = vpop.xlane.xlu0 %1797 }
 0x368   : > { %3507 = vpow2.f32 %v1817_v41  ;;  %v1805_v44 = vsub.f32 %v1773_v17, %v1795_v42  ;;  %v1806_v45 = vsub.f32 %v1774_v13, %v1798_v43 }
 0x369   : > { %v3500_v46 = vpop.eup %3499 }
 0x36a   : > { %v3502_v47 = vpop.eup %3501  ;;  %v1819_v48 = vmul.f32 1.442695, %v1805_v44  ;;  %v1821_v49 = vmul.f32 1.442695, %v1806_v45  ;;  %v1826_v50 = vsel %vm1174_vm3, %v3500_v46, 0.0 }
 0x36b   : > { %v1156_v51 = vpop.permute.xlu1 %1155  ;;  %1827 = vadd.xlane.f32.xlu0 %v1826_v50  ;;  %v1829_v52 = vsel %vm1174_vm3, %v3502_v47, 0.0  ;;  %v1159_v4 = vpop.permute.xlu0 %1158 }
 0x36c   : > { %3509 = vpow2.f32 %v1819_v48  ;;  %1830 = vadd.xlane.f32.xlu1 %v1829_v52  ;;  %3293 = vmatpush3.msra.mxu1 %v1156_v51 }
 0x36d   : > { %3511 = vpow2.f32 %v1821_v49  ;;  %3302 = vmatprep.subr.mxu1 %v3700_v16 }
 0x36e   : > { %v3504_v53 = vpop.eup %3503 }
 0x36f   : > { %v3506_v54 = vpop.eup %3505  ;;  %v1835_v55 = vsel %vm1174_vm3, %v3504_v53, 0.0  ;;  %v1162_v63 = vpop.permute.xlu1 %1161 }
 0x370   : > { %1836 = vadd.xlane.f32.xlu1 %v1835_v55  ;;  %v1832_v56 = vsel %vm1174_vm3, %v3506_v54, 0.0 }
 0x371   : > { %1833 = vadd.xlane.f32.xlu0 %v1832_v56 }
 0x372   : > { %v3508_v57 = vpop.eup %3507 }
 0x373   : > { %v1838_v58 = vsel %vm1174_vm3, %v3508_v57, 0.0  ;;  %v1166_v0 = vpop.permute.xlu1 %1165 }
 0x375   : > { %1839 = vadd.xlane.f32.xlu0 %v1838_v58 }
 0x376   : > { %v4174_v59 = vpop.eup %3509 }
 0x377   : > { %v4176_v60 = vpop.eup %3511  ;;  %v1841_v61 = vsel %vm1174_vm3, %v4174_v59, 0.0 }
 0x378   : > { %1842 = vadd.xlane.f32.xlu1 %v1841_v61  ;;  %v1844_v62 = vsel %vm1174_vm3, %v4176_v60, 0.0 }
 0x379   : > { %1845 = vadd.xlane.f32.xlu0 %v1844_v62 }
 0x389   : > { %1171 = vrot.lane.b32.xlu1 %v4116_v37, %s3702_s16  ;;  %s4399_s16 = scalar_lea.vmem %s4329_s8, %s3988_s20 }
 0x38f   : > { %1168 = vrot.lane.b32.xlu0 %v4116_v37, %s3704_s22 }
 0x3a4   : > { %v1825_v1 = vpop.xlane.xlu1 %1824 }
 0x3a5   : > { %3513 = vrcp.f32 %v1825_v1 }
 0x3af   : > { %v3514_v2 = vpop.eup %3513 }
 0x3b0   : > { %v1855_v3 = vmul.f32 %v3514_v2, %v3498_v24 }
 0x3b2   : > { %3290 = vmatmul.mubr.msk.f32.vlgmr.msra.gmra.mrb[8].mxu0 %vm1174_vm3, %v1855_v3 }
 0x3b3   : > { %3298 = vmatpush3.msra.mxu0 %v1159_v4  ;;  %3299 = vmatprep.mubr.msk.f32.mxu0 %vm3701_vm2, %v3700_v16 }
 0x3b4   : > { %3307 = vmatprep.subr.mxu0 %v3700_v16 }
 0x3f8   : > { %v1828_v5 = vpop.xlane.xlu0 %1827 }
 0x3f9   : > { %3515 = vrcp.f32 %v1828_v5  ;;  %v1831_v6 = vpop.xlane.xlu1 %1830 }
 0x3fa   : > { %3517 = vrcp.f32 %v1831_v6 }
 0x3fd   : > { %v1837_v8 = vpop.xlane.xlu1 %1836 }
 0x3fe   : > { %3519 = vrcp.f32 %v1837_v8  ;;  %v1834_v9 = vpop.xlane.xlu0 %1833 }
 0x3ff   : > { %3521 = vrcp.f32 %v1834_v9 }
 0x402   : > { %v1840_v10 = vpop.xlane.xlu0 %1839 }
 0x403   : > { %v3516_v11 = vpop.eup %3515  ;;  %3523 = vrcp.f32 %v1840_v10 }
 0x404   : > { %v3518_v12 = vpop.eup %3517  ;;  %v1856_v13 = vmul.f32 %v3516_v11, %v3500_v46 }
 0x405   : > { %v1857_v15 = vmul.f32 %v3518_v12, %v3502_v47  ;;  %v1843_v17 = vpop.xlane.xlu1 %1842 }
 0x406   : > { %3525 = vrcp.f32 %v1843_v17  ;;  %v1846_v18 = vpop.xlane.xlu0 %1845  ;;  %3295 = vmatmul.mubr.msk.f32.vlgmr.msra.gmra.mrb[14].mxu1 %vm1174_vm3, %v1856_v13 }
 0x407   : > { %3527 = vrcp.f32 %v1846_v18  ;;  %3303 = vmatpush3.msra.mxu1 %v1162_v63  ;;  %3300 = vmatmul.mubr.msk.f32.vlgmr.msra.gmra.mrb[10].mxu0 %vm1174_vm3, %v1857_v15 }
 0x408   : > { %v3520_v19 = vpop.eup %3519  ;;  %3308 = vmatpush3.msra.mxu0 %v4116_v37  ;;  %3304 = vmatprep.mubr.msk.f32.mxu1 %vm3701_vm2, %v3700_v16 }
 0x409   : > { %v3522_v20 = vpop.eup %3521  ;;  %v1859_v21 = vmul.f32 %v3520_v19, %v3504_v53  ;;  %3309 = vmatprep.mubr.msk.f32.mxu0 %vm3701_vm2, %v3700_v16  ;;  %3312 = vmatprep.subr.mxu1 %v3700_v16  ;;  %v1172_v26 = vpop.permute.xlu1 %1171 }
 0x40a   : > { %v1858_v22 = vmul.f32 %v3522_v20, %v3506_v54  ;;  %v1169_v23 = vpop.permute.xlu0 %1168  ;;  %3317 = vmatprep.subr.mxu0 %v3700_v16  ;;  %v858_v20 = vld [vmem:[%s4050_s11] sm:$0xff] }
 0x40b   : > { %3310 = vmatmul.mubr.msk.f32.vlgmr.msra.gmra.mrb[12].mxu0 %vm1174_vm3, %v1859_v21  ;;  %v859_v21 = vld [vmem:[%s4050_s11 + $0x8] sm:$0xff] }
 0x40c   : > { %3305 = vmatmul.mubr.msk.f32.vlgmr.msra.gmra.mrb[16].mxu1 %vm1174_vm3, %v1858_v22  ;;  %3318 = vmatpush3.msra.mxu0 %v1169_v23  ;;  %v3400_v22 = vpack.c.bf16 %v859_v21, %v858_v20  ;;  %v860_v23 = vld [vmem:[%s4050_s11 + $0x10] sm:$0xff] }
 0x40d   : > { %v3524_v37 = vpop.eup %3523  ;;  %3313 = vmatpush3.msra.mxu1 %v1166_v0  ;;  %3314 = vmatprep.mubr.msk.f32.mxu1 %vm3701_vm2, %v3700_v16  ;;  %v3119_v0 = vld [vmem:[%s4399_s16] ss:$0 sm:$0xff] }
 0x40e   : > { %v1860_v24 = vmul.f32 %v3524_v37, %v3508_v57  ;;  %3322 = vmatprep.subr.mxu1 %v3700_v16  ;;  %3319 = vmatprep.mubr.msk.f32.mxu0 %vm3701_vm2, %v3700_v16  ;;  %v861_v37 = vld [vmem:[%s4050_s11 + $0x18] sm:$0xff] }
 0x40f   : > { %3393 = vmatprep.subr.bf16.mxu0 %v3392_v34 }
 0x410   : > { %v3526_v25 = vpop.eup %3525  ;;  %3315 = vmatmul.mubr.msk.f32.vlgmr.msra.gmra.mrb[18].mxu1 %vm1174_vm3, %v1860_v24  ;;  %v3404_v24 = vpack.c.bf16 %v861_v37, %v860_v23  ;;  %v3130_v23 = vld [vmem:[%s823_s3] ss:$0 sm:$0xff] }
 0x411   : > { %v3528_v27 = vpop.eup %3527  ;;  %v1861_v28 = vmul.f32 %v3526_v25, %v4174_v59  ;;  %3323 = vmatpush3.msra.mxu1 %v1172_v26  ;;  %3324 = vmatprep.mubr.msk.f32.mxu1 %vm3701_vm2, %v3700_v16  ;;  %v863_v25 = vld [vmem:[%s4028_s25] sm:$0xff]  ;;  %v864_v26 = vld [vmem:[%s4028_s25 + $0x8] sm:$0xff] }
 0x412   : > { %v1862_v29 = vmul.f32 %v3528_v27, %v4176_v60  ;;  %3401 = vmatprep.subr.bf16.mxu1 %v3400_v22  ;;  %v865_v27 = vld [vmem:[%s4028_s25 + $0x10] sm:$0xff] }
 0x413   : > { %3320 = vmatmul.mubr.msk.f32.vlgmr.msra.gmra.mrb[14].mxu0 %vm1174_vm3, %v1861_v28  ;;  %v3408_v28 = vpack.c.bf16 %v864_v26, %v863_v25  ;;  %v3131_v26 = vld [vmem:[%s826_s0] ss:$0 sm:$0xff] }
 0x414   : > { %3325 = vmatmul.mubr.msk.f32.vlgmr.msra.gmra.mrb[20].mxu1 %vm1174_vm3, %v1862_v29  ;;  %3395 = vmatpush3.bf16.msra.mxu0 %v3392_v34  ;;  %v866_v29 = vld [vmem:[%s4028_s25 + $0x18] sm:$0xff] }
 0x415   : > { %3397 = vmatprep.subr.bf16.mxu0 %v3396_v38  ;;  %3403 = vmatpush3.bf16.msra.mxu1 %v3400_v22 }
 0x416   : > { %3405 = vmatprep.subr.bf16.mxu1 %v3404_v24 }
 0x418   : > { %3399 = vmatpush3.bf16.msra.mxu0 %v3396_v38 }
 0x419   : > { %3407 = vmatpush3.bf16.msra.mxu1 %v3404_v24  ;;  %3409 = vmatprep.subr.bf16.mxu0 %v3408_v28 }
 0x485   : > { %v1932_v30 = vpop.f32.mrb[8].mxu0 }
 0x486   : > { %v3291_v31 = vpop.f32.mrb[9].mxu0 }
 0x487   : > { %v867_v31 = vld [vmem:[%s4028_s25 + $0x20] sm:$0xff] }
 0x488   : > { %v3416_v33 = vpack.c.bf16 %v868_v32, %v867_v31 }
 0x4d9   : > { %v2005_v39 = vpop.f32.mrb[14].mxu1 }
 0x4da   : > { %v2078_v40 = vpop.f32.mrb[10].mxu0  ;;  %2448 = vrot.lane.b32.xlu0 %v2005_v39, %s3705_s17  ;;  %v3296_v16 = vpop.f32.mrb[15].mxu1 }
 0x4db   : > { %2452 = vrot.lane.b32.xlu1 %v2078_v40, %s3706_s5  ;;  %v3301_v41 = vpop.f32.mrb[11].mxu0 }
 0x4dc   : > { %v3122_v41 = vld [vmem:[%s817_s27] ss:$0 sm:$0xff] }
 0x4de   : > { %v2224_v42 = vpop.f32.mrb[12].mxu0 }
 0x4df   : > { %v2151_v43 = vpop.f32.mrb[16].mxu1  ;;  %v3311_v44 = vpop.f32.mrb[13].mxu0 }
 0x4e0   : > { %2456 = vrot.lane.b32.xlu1 %v2151_v43, %s3707_s18  ;;  %v3306_v45 = vpop.f32.mrb[17].mxu1  ;;  %v3123_v43 = vld [vmem:[%s820_s28] ss:$0 sm:$0xff]  ;;  %s4400_s28 = scalar_lea.vmem %s4331_s10, %s3988_s20 }
 0x4e3   : > { %v2297_v46 = vpop.f32.mrb[18].mxu1 }
 0x4e4   : > { %2465 = vrot.lane.b32.xlu0 %v2297_v46, %s3705_s17  ;;  %v3316_v47 = vpop.f32.mrb[19].mxu1 }
 0x4e6   : > { %v2370_v48 = vpop.f32.mrb[14].mxu0 }
 0x4e7   : > { %v2443_v49 = vpop.f32.mrb[20].mxu1  ;;  %v3321_v50 = vpop.f32.mrb[15].mxu0 }
 0x4e8   : > { %2469 = vrot.lane.b32.xlu0 %v2370_v48, %s3706_s5  ;;  %2473 = vrot.lane.b32.xlu1 %v2443_v49, %s3707_s18  ;;  %v3326_v51 = vpop.f32.mrb[21].mxu1  ;;  %v869_v50 = vld [vmem:[%s4028_s25 + $0x30] sm:$0xff]  ;;  %s3708_s18 = smov [#allocation8]  }
 0x4e9   : > { %v870_v51 = vld [vmem:[%s4028_s25 + $0x38] sm:$0xff]  ;;  %s4401_s25 = sld [smem:[#allocation16_spill]]  ;;  %s2840_s30 = sshll.u32 %s3708_s18, 4  ;;  %s2841_s30 = int_to_ptr.vmem [resolvable:$true] %s2840_s30 }
 0x4ea   : > { %s3625_s3 = scalar_lea.vmem %s2841_s30, 256  ;;  %p3632_p9 = scmp.lt.s32.totalorder %s2841_s30, %s2841_s30 }
 0x4eb   : > { %p3626_p6 = scmp.ne.s32.totalorder %s2841_s30, %s3625_s3  ;;  %p3633_p13 = scmp.lt.s32.totalorder %s3625_s3, %s3625_s3 }
 0x4ed   : > { %p3634_p7 = por %p3633_p13, %p3632_p9 }
 0x4ef   : > { %p3450_p0 = scmp.eq.s32.totalorder %s4401_s25, 1 }
 0x4f1   : > { %p3627_p8 = pnand %p3626_p6, %p3450_p0 }
 0x4f3   : > { %p3628_p11 = pneg %p3627_p8 }
 0x4f5   : > { %p3635_p12 = pnand %p3634_p7, %p3628_p11 }
 0x54c   : > { %v2449_v52 = vpop.permute.xlu0 %2448 }
 0x54d   : > { %v2453_v53 = vpop.permute.xlu1 %2452  ;;  %v2459_v54 = vsel %vm1174_vm3, %v1932_v30, %v2449_v52  ;;  %v3412_v30 = vpack.c.bf16 %v866_v29, %v865_v27  ;;  %v3420_v52 = vpack.c.bf16 %v870_v51, %v869_v50 }
 0x54e   : > { %v2461_v55 = vsel %vm2460_vm4, %v2459_v54, %v2453_v53  ;;  %v3124_v53 = vld [vmem:[%s4400_s28] ss:$0 sm:$0xff] }
 0x552   : > { %v2457_v56 = vpop.permute.xlu1 %2456 }
 0x553   : > { %v2463_v57 = vsel %vm2462_vm5, %v2461_v55, %v2457_v56 }
 0x554   : > { %3335 = vmatprep.mubr.msk.f32.mxu0 %vm882_vm1, %v2463_v57 }
 0x556   : > { %v2466_v58 = vpop.permute.xlu0 %2465 }
 0x557   : > { %v2476_v59 = vsel %vm1174_vm3, %v2224_v42, %v2466_v58 }
 0x55a   : > { %v2470_v60 = vpop.permute.xlu0 %2469  ;;  %v2474_v61 = vpop.permute.xlu1 %2473 }
 0x55b   : > { %v2477_v62 = vsel %vm2460_vm4, %v2476_v59, %v2470_v60  ;;  %v3127_v60 = vld [vmem:[%s814_s1] ss:$0 sm:$0xff] }
 0x55c   : > { %v2478_v63 = vsel %vm2462_vm5, %v2477_v62, %v2474_v61 }
 0x55d   : > { %3336 = vmatmul.mubr.msk.f32.vlgmr.msra.gmra.mrb[16].mxu0 %vm882_vm1, %v2478_v63 }
 0x55e   : > { %3411 = vmatpush3.bf16.msra.mxu0 %v3408_v28 }
 0x55f   : > { %3413 = vmatprep.subr.bf16.mxu0 %v3412_v30 }
 0x562   : > { %3415 = vmatpush3.bf16.msra.mxu0 %v3412_v30 }
 0x563   : > { %3417 = vmatprep.subr.bf16.mxu0 %v3416_v33 }
 0x566   : > { %3419 = vmatpush3.bf16.msra.mxu0 %v3416_v33 }
 0x567   : > { %3421 = vmatprep.subr.bf16.mxu0 %v3420_v52 }
 0x56a   : > { %3423 = vmatpush3.bf16.msra.mxu0 %v3420_v52 }
 0x630   : > { %v3337_v1 = vpop.f32.mrb[16].mxu0 }
 0x631   : > { %v2563_v2 = vadd.f32 %v3337_v1, %v3119_v0  ;;  %v2557_v3 = vpop.f32.mrb[17].mxu0 }
 0x632   : > { %v2558_v4 = vadd.f32 %v3119_v0, %v2557_v3 }
 0x633   : > { %v2567_v5 = vadd.f32 %v2563_v2, %v4064_v14 }
 0x634   : > { %v2566_v6 = vadd.f32 %v2558_v4, %v4054_v7 }
 0x635   : > { %v2571_v8 = vsel %vm882_vm1, %v2567_v5, 0.0 }
 0x636   : > { %2572 = vadd.xlane.f32.xlu1 %v2571_v8  ;;  %v2568_v9 = vsel %vm882_vm1, %v2566_v6, 0.0 }
 0x637   : > { %2569 = vadd.xlane.f32.xlu0 %v2568_v9 }
 0x6c3   : > { %v2573_v10 = vpop.xlane.xlu1 %2572 }
 0x6c4   : > { %v2576_v11 = vmul.f32 0.03125, %v2573_v10  ;;  %v2570_v12 = vpop.xlane.xlu0 %2569 }
 0x6c5   : > { %v2575_v13 = vmul.f32 0.03125, %v2570_v12 }
 0x6c6   : > { %v2578_v15 = vsub.f32 %v2567_v5, %v2576_v11 }
 0x6c7   : > { %v2577_v17 = vsub.f32 %v2566_v6, %v2575_v13 }
 0x6c8   : > { %v2580_v14 = vmul.f32 %v2578_v15, %v2578_v15 }
 0x6c9   : > { %v2579_v18 = vmul.f32 %v2577_v17, %v2577_v17 }
 0x6ca   : > { %v2584_v19 = vsel %vm882_vm1, %v2580_v14, 0.0 }
 0x6cb   : > { %v2581_v7 = vsel %vm882_vm1, %v2579_v18, 0.0 }
 0x6cc   : > { %2582 = vadd.xlane.f32.xlu0 %v2581_v7 }
 0x6d0   : > { %2585 = vadd.xlane.f32.xlu0 %v2584_v19 }
 0x759   : > { %v2583_v34 = vpop.xlane.xlu0 %2582 }
 0x75a   : > { %v2587_v35 = vmul.f32 0.03125, %v2583_v34 }
 0x75c   : > { %v2589_v36 = vadd.f32 1e-05, %v2587_v35 }
 0x75d   : > { %v2586_v38 = vpop.xlane.xlu0 %2585 }
 0x75e   : > { %3529 = vrsqrt.f32 %v2589_v36  ;;  %v2588_v39 = vmul.f32 0.03125, %v2586_v38 }
 0x760   : > { %v2590_v40 = vadd.f32 1e-05, %v2588_v39 }
 0x762   : > { %3531 = vrsqrt.f32 %v2590_v40 }
 0x768   : > { %v3530_v16 = vpop.eup %3529 }
 0x769   : > { %v2593_v42 = vmul.f32 %v3530_v16, %v2577_v17 }
 0x76b   : > { %v2601_v44 = vmul.f32 %v3122_v41, %v2593_v42 }
 0x76c   : > { %v3532_v45 = vpop.eup %3531 }
 0x76d   : > { %v2594_v46 = vmul.f32 %v3532_v45, %v2578_v15  ;;  %v2609_v47 = vadd.f32 %v3123_v43, %v2601_v44 }
 0x76f   : > { %v2602_v48 = vmul.f32 %v3122_v41, %v2594_v46  ;;  %3346 = vmatprep.mubr.msk.f32.mxu1 %vm882_vm1, %v2609_v47 }
 0x771   : > { %v2610_v49 = vadd.f32 %v3123_v43, %v2602_v48 }
 0x773   : > { %3347 = vmatmul.mubr.msk.f32.vlgmr.msra.gmra.mrb[22].mxu1 %vm882_vm1, %v2610_v49 }
 0x846   : > { %v3348_v54 = vpop.f32.mrb[22].mxu1 }
 0x847   : > { %v2695_v55 = vadd.f32 %v3348_v54, %v3124_v53  ;;  %v2689_v56 = vpop.f32.mrb[23].mxu1 }
 0x848   : > { %v2690_v57 = vadd.f32 %v3124_v53, %v2689_v56 }
 0x849   : > { %v2699_v59 = vmax.f32 %v2695_v55, 0.0 }
 0x84a   : > { %v2698_v58 = vmax.f32 %v2690_v57, 0.0 }
 0x84c   : > { %3365 = vmatprep.mubr.msk.f32.mxu0 %vm2706_vm6, %v2698_v58 }
 0x84d   : > { %3366 = vmatmul.mubr.msk.f32.vlgmr.msra.gmra.mrb[18].mxu0 %vm2706_vm6, %v2699_v59 }
 0x920   : > { %v3367_v61 = vpop.f32.mrb[18].mxu0 }
 0x921   : > { %v2785_v62 = vadd.f32 %v3367_v61, %v3127_v60  ;;  %v2779_v63 = vpop.f32.mrb[19].mxu0 }
 0x922   : > { %v2780_v0 = vadd.f32 %v3127_v60, %v2779_v63 }
 0x923   : > { %v2789_v1 = vadd.f32 %v2785_v62, %v2610_v49 }
 0x924   : > { %v2788_v2 = vadd.f32 %v2780_v0, %v2609_v47 }
 0x925   : > { %v2793_v3 = vsel %vm882_vm1, %v2789_v1, 0.0 }
 0x926   : > { %2794 = vadd.xlane.f32.xlu0 %v2793_v3  ;;  %v2790_v4 = vsel %vm882_vm1, %v2788_v2, 0.0 }
 0x927   : > { %2791 = vadd.xlane.f32.xlu1 %v2790_v4 }
 0x9b3   : > { %v2795_v5 = vpop.xlane.xlu0 %2794 }
 0x9b4   : > { %v2797_v6 = vmul.f32 0.03125, %v2795_v5  ;;  %v2792_v8 = vpop.xlane.xlu1 %2791 }
 0x9b5   : > { %v2796_v9 = vmul.f32 0.03125, %v2792_v8 }
 0x9b6   : > { %v2799_v10 = vsub.f32 %v2789_v1, %v2797_v6 }
 0x9b7   : > { %v2798_v11 = vsub.f32 %v2788_v2, %v2796_v9 }
 0x9b8   : > { %v2801_v12 = vmul.f32 %v2799_v10, %v2799_v10 }
 0x9b9   : > { %v2800_v13 = vmul.f32 %v2798_v11, %v2798_v11 }
 0x9ba   : > { %v2805_v15 = vsel %vm882_vm1, %v2801_v12, 0.0 }
 0x9bb   : > { %2806 = vadd.xlane.f32.xlu0 %v2805_v15  ;;  %v2802_v17 = vsel %vm882_vm1, %v2800_v13, 0.0 }
 0x9bc   : > { %2803 = vadd.xlane.f32.xlu1 %v2802_v17 }
 0xa48   : > { %v2807_v18 = vpop.xlane.xlu0 %2806 }
 0xa49   : > { %v2809_v7 = vmul.f32 0.03125, %v2807_v18  ;;  %v2804_v14 = vpop.xlane.xlu1 %2803 }
 0xa4a   : > { %v2808_v19 = vmul.f32 0.03125, %v2804_v14 }
 0xa4b   : > { %v2811_v20 = vadd.f32 1e-05, %v2809_v7 }
 0xa4c   : > { %v2810_v21 = vadd.f32 1e-05, %v2808_v19 }
 0xa4d   : > { %3533 = vrsqrt.f32 %v2811_v20 }
 0xa4e   : > { %3535 = vrsqrt.f32 %v2810_v21 }
 0xa57   : > { %v3534_v22 = vpop.eup %3533 }
 0xa58   : > { %v3536_v37 = vpop.eup %3535  ;;  %v2815_v24 = vmul.f32 %v3534_v22, %v2799_v10 }
 0xa59   : > { %v2814_v25 = vmul.f32 %v3536_v37, %v2798_v11 }
 0xa5a   : > { %v2823_v27 = vmul.f32 %v3130_v23, %v2815_v24 }
 0xa5b   : > { %v2822_v28 = vmul.f32 %v3130_v23, %v2814_v25 }
 0xa5c   : > { %v2831_v29 = vadd.f32 %v3131_v26, %v2823_v27 }
 0xa5d   : > { %v2830_v30 = vadd.f32 %v3131_v26, %v2822_v28 }
 0xa5e   : > { %2833 = vst.msk [vmem:[#allocation8 + $0x8] sm:$0xff] %vm882_vm1, %v2831_v29 }
 0xa5f   : > { %2832 = vst.msk [vmem:[#allocation8] sm:$0xff] %vm882_vm1, %v2830_v30 }
 0xa60   : > { %3638 = shalt.err (!%p3635_p12)
}
 0xa61   : > { %s4403_s26 = sld [smem:[#allocation27_spill]] }
 0xa67   : > { %s4404_s16 = smov %s4403_s26  ;;  %s3639_s11 = scalar_lea.hbm %s4403_s26, 256 }
 0xa68   : > { %p3640_p2 = scmp.ne.s32.totalorder %s4404_s16, %s3639_s11  ;;  %p3645_p3 = scmp.lt.u32.totalorder %s3639_s11, %s4404_s16 }
 0xa6a   : > { %p3641_p4 = pnand %p3640_p2, %p3450_p0 }
 0xa6c   : > { %p3642_p5 = pneg %p3641_p4 }
 0xa6e   : > { %p3647_p1 = pnand %p3645_p3, %p3642_p5 }
 0xa70   : > { %3650 = shalt.err (!%p3647_p1)
}
 0xa71   : > { %s3709_s19 = smov 128  }
 0xa72   : > { %3433 = dma.vmem_to_hbm [thread:$0]  (%p3450_p0), %s2841_s30, 256, %s4404_s16, [#allocation4], %s3709_s19, %s3709_s19, %s3705_s17  }
 0xa73   : > { %3676 = dma.done.wait (%p3450_p0), [#allocation4], 256  }
 0xa74   : > { %3678 = vsyncadd (%p3450_p0), [#allocation4], 4294967040 }
 0xa75 PF: > { %s4405_s27 = sld [smem:[#allocation14_spill]]  ;;  %s4406_s24 = sld [smem:[#allocation12_spill]] }
 0xa76   : > { %s4407_s25 = sld [smem:[#allocation13_spill]]  ;;  %s4408_s26 = sld [smem:[#allocation15_spill]] }
 0xa7b   : > { %p29_p10 = scmp.ge.s32.totalorder %s4405_s27, 4  }
 0xa7d   :  { %31 = sbr.rel (!%p29_p10) target bundleno = 16 (0x10), region = 187 }
 0xa84   :  { %2856 = vsyncpa [#allocation3], 1 }
 0xa85   :  { %2858 = vsyncpa [#allocation3 + $0x1], 1 }
 0xa86   :  { %2859 = vsyncpa [#allocation6], 1 }
 0xa87   :  { %2861 = vsyncpa [#allocation6 + $0x1], 1 }
 0xa88   :  { %2862 = vsyncpa [#allocation4], 1 }
 0xa89   :  { %2864 = vsyncpa [#allocation4 + $0x1], 1 }

</bundles_post_ra>
